<compile_context>
chip_gen: v6e
topology: v6e:2x2x1
jax: 0.10.0
libtpu: 0.0.40
codegen_flags: <defaults>
</compile_context>

<pallas_src>
import functools

import jax
import jax.numpy as jnp
from jax.experimental import pallas as pl
from jax.experimental.pallas import tpu as pltpu


def _block_kernel(xf_ref, xt_ref, mask_ref,
                  g1_ref, be1_ref,
                  wq_ref, bq_ref, wkv_ref, bkv_ref,
                  wo_ref, bo_ref,
                  g2_ref, be2_ref,
                  w1_ref, bf1_ref, w2_ref, bf2_ref,
                  o_ref,
                  k_s, v_s,
                  *, num_heads):
    S = xf_ref.shape[1]
    D = xf_ref.shape[2]
    H = num_heads
    W = D // H
    eps = 1e-6
    scale = 1.0 / (float(W) ** 0.5)
    bf16 = jnp.bfloat16

    def layernorm(v, g, b):
        mu = jnp.mean(v, axis=-1, keepdims=True)
        var = jnp.mean((v - mu) ** 2, axis=-1, keepdims=True)
        return (v - mu) * jax.lax.rsqrt(var + eps) * g + b

    def split_heads(m):
        # (rows, D) -> (H, rows, W); leading-axis stack (no lane-axis concat).
        return jnp.stack([m[:, h * W:(h + 1) * W] for h in range(H)], axis=0)

    qi = pl.program_id(1)

    # ---- once per sequence: LN1 over full seq + fused K/V projection -> scratch ----
    @pl.when(qi == 0)
    def _():
        xf = xf_ref[0]                                            # (S, D) f32
        h1f = layernorm(xf, g1_ref[...], be1_ref[...])
        kv = jnp.dot(h1f.astype(bf16), wkv_ref[...],
                     preferred_element_type=jnp.float32) + bkv_ref[...]
        k_s[...] = split_heads(kv[:, :D]).astype(bf16)            # (H, S, W)
        v_s[...] = split_heads(kv[:, D:]).astype(bf16)            # (H, S, W)

    # ---- per query tile ----
    xt = xt_ref[0]                                                # (Tq, D) f32
    h1t = layernorm(xt, g1_ref[...], be1_ref[...])
    q = jnp.dot(h1t.astype(bf16), wq_ref[...],
                preferred_element_type=jnp.float32) + bq_ref[...]
    q = q * scale                                                 # fold 1/sqrt(W) once
    q3 = split_heads(q).astype(bf16)                              # (H, Tq, W)

    k3 = k_s[...]                                                 # (H, S, W) bf16
    v3 = v_s[...]
    mask_add = -10000.0 * (1.0 - mask_ref[0])                     # (1, S) f32

    scores = jnp.einsum('hqw,hkw->hqk', q3, k3,
                        preferred_element_type=jnp.float32)       # (H, Tq, S) f32
    scores = scores + mask_add[None]
    scores = scores - jnp.max(scores, axis=-1, keepdims=True)
    p = jnp.exp(scores)
    p = p * pl.reciprocal(jnp.sum(p, axis=-1, keepdims=True), approx=True)

    attn = jnp.einsum('hqk,hkw->hqw', p.astype(bf16), v3,
                      preferred_element_type=jnp.float32)         # (H, Tq, W)
    # output projection folded per head (Wo pre-reshaped to (H, W, D)); the sum
    # over heads replaces the lane-axis concatenate of the previous version.
    proj = jnp.einsum('hqw,hwd->hqd', attn.astype(bf16), wo_ref[...],
                      preferred_element_type=jnp.float32)         # (H, Tq, D)
    h = jnp.sum(proj, axis=0) + bo_ref[...]                       # (Tq, D)
    x1 = xt + h                                                   # residual 1

    # ---- norm2 + position-wise feed-forward (exact erf GELU) ----
    h2 = layernorm(x1, g2_ref[...], be2_ref[...])
    f = jnp.dot(h2.astype(bf16), w1_ref[...],
                preferred_element_type=jnp.float32) + bf1_ref[...]
    f = 0.5 * f * (1.0 + jax.lax.erf(f * (1.0 / jnp.sqrt(jnp.float32(2.0)))))
    f = jnp.dot(f.astype(bf16), w2_ref[...],
                preferred_element_type=jnp.float32) + bf2_ref[...]

    o_ref[0] = x1 + f                                             # residual 2


def block_forward(x, mask, params, num_heads, *, q_tile=None):
    B, S, D = x.shape
    FF = params["w1"].shape[1]
    H = num_heads
    W = D // H
    assert D % H == 0

    Tq = q_tile if q_tile is not None else min(S, 256)
    assert S % Tq == 0 and (Tq == S or Tq % 8 == 0)
    T = S // Tq

    bf16 = jnp.bfloat16
    # Weight packing (plain JAX, outside the kernel): bf16 matmul operands,
    # fused K/V weight, per-head output projection.
    wq = params["wq"].astype(bf16)
    wkv = jnp.concatenate([params["wk"], params["wv"]], axis=1).astype(bf16)
    bkv = jnp.concatenate([params["bk"], params["bv"]], axis=1)
    wo_h = params["wo"].reshape(H, W, D).astype(bf16)
    w1 = params["w1"].astype(bf16)
    w2 = params["w2"].astype(bf16)
    mask3 = mask.reshape(B, 1, S).astype(jnp.float32)

    rep2 = lambda shape: pl.BlockSpec(shape, lambda b, t: (0, 0))

    in_specs = [
        pl.BlockSpec((1, S, D), lambda b, t: (b, 0, 0)),    # x, full sequence (K/V path)
        pl.BlockSpec((1, Tq, D), lambda b, t: (b, t, 0)),   # x, query tile
        pl.BlockSpec((1, 1, S), lambda b, t: (b, 0, 0)),    # mask
        rep2((1, D)), rep2((1, D)),                         # norm1 gamma/beta
        rep2((D, D)), rep2((1, D)),                         # Wq, bq
        rep2((D, 2 * D)), rep2((1, 2 * D)),                 # fused Wkv, bkv
        pl.BlockSpec((H, W, D), lambda b, t: (0, 0, 0)),    # Wo per head
        rep2((1, D)),                                       # bo
        rep2((1, D)), rep2((1, D)),                         # norm2 gamma/beta
        rep2((D, FF)), rep2((1, FF)),                       # fc1
        rep2((FF, D)), rep2((1, D)),                        # fc2
    ]

    kernel = functools.partial(_block_kernel, num_heads=H)
    return pl.pallas_call(
        kernel,
        out_shape=jax.ShapeDtypeStruct((B, S, D), jnp.float32),
        grid_spec=pltpu.PrefetchScalarGridSpec(
            num_scalar_prefetch=0,
            grid=(B, T),
            in_specs=in_specs,
            out_specs=pl.BlockSpec((1, Tq, D), lambda b, t: (b, t, 0)),
            scratch_shapes=[pltpu.VMEM((H, S, W), bf16),    # K per head
                            pltpu.VMEM((H, S, W), bf16)],   # V per head
        ),
        compiler_params=pltpu.CompilerParams(
            dimension_semantics=("parallel", "arbitrary"),
            vmem_limit_bytes=48 * 1024 * 1024,
        ),
    )(x, x, mask3,
      params["g1"], params["be1"],
      wq, params["bq"], wkv, bkv,
      wo_h, params["bo"],
      params["g2"], params["be2"],
      w1, params["bf1"], w2, params["bf2"])


def reference(x, mask, params, num_heads):
    """Pure-JAX f32 reference reproducing the PyTorch Block forward."""
    def ln(v, g, b):
        mu = v.mean(-1, keepdims=True)
        var = ((v - mu) ** 2).mean(-1, keepdims=True)
        return (v - mu) / jnp.sqrt(var + 1e-6) * g + b

    B, S, D = x.shape
    W = D // num_heads
    h1 = ln(x, params["g1"], params["be1"])
    q = h1 @ params["wq"] + params["bq"]
    k = h1 @ params["wk"] + params["bk"]
    v = h1 @ params["wv"] + params["bv"]
    q = q.reshape(B, S, num_heads, W).transpose(0, 2, 1, 3)
    k = k.reshape(B, S, num_heads, W).transpose(0, 2, 1, 3)
    v = v.reshape(B, S, num_heads, W).transpose(0, 2, 1, 3)
    scores = q @ k.transpose(0, 1, 3, 2) / jnp.sqrt(jnp.float32(W))
    scores = scores - 10000.0 * (1.0 - mask[:, None, None, :])
    scores = jax.nn.softmax(scores, axis=-1)
    h = (scores @ v).transpose(0, 2, 1, 3).reshape(B, S, D)
    h = h @ params["wo"] + params["bo"]
    x1 = x + h
    h2 = ln(x1, params["g2"], params["be2"])
    f = h2 @ params["w1"] + params["bf1"]
    f = 0.5 * f * (1.0 + jax.lax.erf(f / jnp.sqrt(jnp.float32(2.0))))
    f = f @ params["w2"] + params["bf2"]
    return x1 + f


if __name__ == "__main__":
    B, S, D, H, FF = 2, 8, 32, 4, 64

    key = jax.random.PRNGKey(0)
    keys = jax.random.split(key, 10)

    def linear(k, din, dout):
        kw, kb = jax.random.split(k)
        w = jax.random.normal(kw, (din, dout), jnp.float32) * 0.05
        b = jax.random.normal(kb, (1, dout), jnp.float32) * 0.05
        return w, b

    wq, bq = linear(keys[0], D, D)
    wk, bk = linear(keys[1], D, D)
    wv, bv = linear(keys[2], D, D)
    wo, bo = linear(keys[3], D, D)
    w1, bf1 = linear(keys[4], D, FF)
    w2, bf2 = linear(keys[5], FF, D)

    params = dict(
        wq=wq, bq=bq, wk=wk, bk=bk, wv=wv, bv=bv, wo=wo, bo=bo,
        w1=w1, bf1=bf1, w2=w2, bf2=bf2,
        g1=jnp.ones((1, D), jnp.float32), be1=jnp.zeros((1, D), jnp.float32),
        g2=jnp.ones((1, D), jnp.float32), be2=jnp.zeros((1, D), jnp.float32),
    )

    x = jax.random.normal(keys[6], (B, S, D), jnp.float32)
    mask = (jax.random.uniform(keys[7], (B, S)) > 0.2).astype(jnp.float32)

    out = block_forward(x, mask, params, num_heads=H)
    out = jax.block_until_ready(out)

    ref = reference(x, mask, params, num_heads=H)
    assert out.shape == (B, S, D)
    # bf16 matmul operands + approx reciprocal => slightly looser tolerance.
    max_err = float(jnp.max(jnp.abs(out - ref)))
    assert max_err < 3e-2, max_err

    print("KERNEL_OK")
</pallas_src>

<mosaic_0001>
module attributes {stable_mosaic.version = 11 : i64} {
  func.func @_block_kernel(%arg0: i32, %arg1: i32, %arg2: memref<1x8x32xf32, #tpu.memory_space<vmem>>, %arg3: memref<1x8x32xf32, #tpu.memory_space<vmem>>, %arg4: memref<1x1x8xf32, #tpu.memory_space<vmem>>, %arg5: memref<1x32xf32, #tpu.memory_space<vmem>>, %arg6: memref<1x32xf32, #tpu.memory_space<vmem>>, %arg7: memref<32x32xbf16, #tpu.memory_space<vmem>>, %arg8: memref<1x32xf32, #tpu.memory_space<vmem>>, %arg9: memref<32x64xbf16, #tpu.memory_space<vmem>>, %arg10: memref<1x64xf32, #tpu.memory_space<vmem>>, %arg11: memref<4x8x32xbf16, #tpu.memory_space<vmem>>, %arg12: memref<1x32xf32, #tpu.memory_space<vmem>>, %arg13: memref<1x32xf32, #tpu.memory_space<vmem>>, %arg14: memref<1x32xf32, #tpu.memory_space<vmem>>, %arg15: memref<32x64xbf16, #tpu.memory_space<vmem>>, %arg16: memref<1x64xf32, #tpu.memory_space<vmem>>, %arg17: memref<64x32xbf16, #tpu.memory_space<vmem>>, %arg18: memref<1x32xf32, #tpu.memory_space<vmem>>, %arg19: memref<1x8x32xf32, #tpu.memory_space<vmem>>, %arg20: memref<4x8x8xbf16, #tpu.memory_space<vmem>>, %arg21: memref<4x8x8xbf16, #tpu.memory_space<vmem>>) attributes {dimension_semantics = [#tpu.dimension_semantics<parallel>, #tpu.dimension_semantics<arbitrary>], iteration_bounds = array<i64: 2, 1>, scalar_prefetch = 0 : i64, scratch_operands = 2 : i64, tpu.core_type = #tpu.core_type<tc>, window_params = [{transform_indices = @transform_0, window_bounds = array<i64: 1, 8, 32>}, {transform_indices = @transform_1, window_bounds = array<i64: 1, 8, 32>}, {transform_indices = @transform_2, window_bounds = array<i64: 1, 1, 8>}, {pipeline_mode = #tpu.pipeline_mode<synchronous>, transform_indices = @transform_3, window_bounds = array<i64: 1, 32>}, {pipeline_mode = #tpu.pipeline_mode<synchronous>, transform_indices = @transform_4, window_bounds = array<i64: 1, 32>}, {pipeline_mode = #tpu.pipeline_mode<synchronous>, transform_indices = @transform_5, window_bounds = array<i64: 32, 32>}, {pipeline_mode = #tpu.pipeline_mode<synchronous>, transform_indices = @transform_6, window_bounds = array<i64: 1, 32>}, {pipeline_mode = #tpu.pipeline_mode<synchronous>, transform_indices = @transform_7, window_bounds = array<i64: 32, 64>}, {pipeline_mode = #tpu.pipeline_mode<synchronous>, transform_indices = @transform_8, window_bounds = array<i64: 1, 64>}, {pipeline_mode = #tpu.pipeline_mode<synchronous>, transform_indices = @transform_9, window_bounds = array<i64: 4, 8, 32>}, {pipeline_mode = #tpu.pipeline_mode<synchronous>, transform_indices = @transform_10, window_bounds = array<i64: 1, 32>}, {pipeline_mode = #tpu.pipeline_mode<synchronous>, transform_indices = @transform_11, window_bounds = array<i64: 1, 32>}, {pipeline_mode = #tpu.pipeline_mode<synchronous>, transform_indices = @transform_12, window_bounds = array<i64: 1, 32>}, {pipeline_mode = #tpu.pipeline_mode<synchronous>, transform_indices = @transform_13, window_bounds = array<i64: 32, 64>}, {pipeline_mode = #tpu.pipeline_mode<synchronous>, transform_indices = @transform_14, window_bounds = array<i64: 1, 64>}, {pipeline_mode = #tpu.pipeline_mode<synchronous>, transform_indices = @transform_15, window_bounds = array<i64: 64, 32>}, {pipeline_mode = #tpu.pipeline_mode<synchronous>, transform_indices = @transform_16, window_bounds = array<i64: 1, 32>}, {transform_indices = @transform_17, window_bounds = array<i64: 1, 8, 32>}]} {
    %c0_i32 = arith.constant 0 : i32
    %0 = arith.cmpi eq, %arg1, %c0_i32 : i32
    %1 = arith.extui %0 : i1 to i32
    %c0_i32_0 = arith.constant 0 : i32
    %2 = arith.cmpi ne, %1, %c0_i32_0 : i32
    scf.if %2 {
      %c0_65 = arith.constant 0 : index
      %c0_66 = arith.constant 0 : index
      %c0_67 = arith.constant 0 : index
      %129 = vector.load %arg2[%c0_65, %c0_66, %c0_67] : memref<1x8x32xf32, #tpu.memory_space<vmem>>, vector<1x8x32xf32>
      %130 = vector.shape_cast %129 : vector<1x8x32xf32> to vector<8x32xf32>
      %c0_68 = arith.constant 0 : index
      %c0_69 = arith.constant 0 : index
      %131 = vector.load %arg5[%c0_68, %c0_69] : memref<1x32xf32, #tpu.memory_space<vmem>>, vector<1x32xf32>
      %c0_70 = arith.constant 0 : index
      %c0_71 = arith.constant 0 : index
      %132 = vector.load %arg6[%c0_70, %c0_71] : memref<1x32xf32, #tpu.memory_space<vmem>>, vector<1x32xf32>
      %cst_72 = arith.constant dense<0.000000e+00> : vector<8xf32>
      %133 = vector.multi_reduction <add>, %130, %cst_72 [1] : vector<8x32xf32> to vector<8xf32>
      %134 = vector.shape_cast %133 : vector<8xf32> to vector<8x1xf32>
      %cst_73 = arith.constant 3.200000e+01 : f32
      %135 = vector.broadcast %cst_73 : f32 to vector<8x1xf32>
      %136 = arith.divf %134, %135 : vector<8x1xf32>
      %137 = vector.broadcast %136 : vector<8x1xf32> to vector<8x32xf32>
      %138 = arith.subf %130, %137 : vector<8x32xf32>
      %139 = arith.mulf %138, %138 : vector<8x32xf32>
      %cst_74 = arith.constant dense<0.000000e+00> : vector<8xf32>
      %140 = vector.multi_reduction <add>, %139, %cst_74 [1] : vector<8x32xf32> to vector<8xf32>
      %141 = vector.shape_cast %140 : vector<8xf32> to vector<8x1xf32>
      %cst_75 = arith.constant 3.200000e+01 : f32
      %142 = vector.broadcast %cst_75 : f32 to vector<8x1xf32>
      %143 = arith.divf %141, %142 : vector<8x1xf32>
      %144 = vector.broadcast %136 : vector<8x1xf32> to vector<8x32xf32>
      %145 = arith.subf %130, %144 : vector<8x32xf32>
      %cst_76 = arith.constant 9.99999997E-7 : f32
      %146 = vector.broadcast %cst_76 : f32 to vector<8x1xf32>
      %147 = arith.addf %143, %146 : vector<8x1xf32>
      %148 = math.rsqrt %147 : vector<8x1xf32>
      %149 = vector.broadcast %148 : vector<8x1xf32> to vector<8x32xf32>
      %150 = arith.mulf %145, %149 : vector<8x32xf32>
      %151 = vector.broadcast %131 : vector<1x32xf32> to vector<8x32xf32>
      %152 = arith.mulf %150, %151 : vector<8x32xf32>
      %153 = vector.broadcast %132 : vector<1x32xf32> to vector<8x32xf32>
      %154 = arith.addf %152, %153 : vector<8x32xf32>
      %155 = arith.truncf %154 : vector<8x32xf32> to vector<8x32xbf16>
      %c0_77 = arith.constant 0 : index
      %c0_78 = arith.constant 0 : index
      %156 = vector.load %arg9[%c0_77, %c0_78] : memref<32x64xbf16, #tpu.memory_space<vmem>>, vector<32x64xbf16>
      %cst_79 = arith.constant dense<0.000000e+00> : vector<8x64xf32>
      %157 = tpu.matmul %155, %156, %cst_79 {dimension_numbers = #tpu.dot_dimension_numbers<[1], [0], [0], [1], [0, 0, 1, 1], [], []>} : vector<8x32xbf16>, vector<32x64xbf16>, vector<8x64xf32> -> vector<8x64xf32>
      %c0_80 = arith.constant 0 : index
      %c0_81 = arith.constant 0 : index
      %158 = vector.load %arg10[%c0_80, %c0_81] : memref<1x64xf32, #tpu.memory_space<vmem>>, vector<1x64xf32>
      %159 = vector.broadcast %158 : vector<1x64xf32> to vector<8x64xf32>
      %160 = arith.addf %157, %159 : vector<8x64xf32>
      %161 = vector.extract_strided_slice %160 {offsets = [0, 0], sizes = [8, 32], strides = [1, 1]} : vector<8x64xf32> to vector<8x32xf32>
      %162 = vector.extract_strided_slice %161 {offsets = [0, 0], sizes = [8, 8], strides = [1, 1]} : vector<8x32xf32> to vector<8x8xf32>
      %163 = vector.extract_strided_slice %161 {offsets = [0, 8], sizes = [8, 8], strides = [1, 1]} : vector<8x32xf32> to vector<8x8xf32>
      %164 = vector.extract_strided_slice %161 {offsets = [0, 16], sizes = [8, 8], strides = [1, 1]} : vector<8x32xf32> to vector<8x8xf32>
      %165 = vector.extract_strided_slice %161 {offsets = [0, 24], sizes = [8, 8], strides = [1, 1]} : vector<8x32xf32> to vector<8x8xf32>
      %166 = vector.shape_cast %162 : vector<8x8xf32> to vector<1x8x8xf32>
      %167 = vector.shape_cast %163 : vector<8x8xf32> to vector<1x8x8xf32>
      %168 = vector.shape_cast %164 : vector<8x8xf32> to vector<1x8x8xf32>
      %169 = vector.shape_cast %165 : vector<8x8xf32> to vector<1x8x8xf32>
      %170 = tpu.concatenate %166, %167, %168, %169 in 0 : vector<1x8x8xf32>, vector<1x8x8xf32>, vector<1x8x8xf32>, vector<1x8x8xf32> -> vector<4x8x8xf32>
      %171 = arith.truncf %170 : vector<4x8x8xf32> to vector<4x8x8xbf16>
      %c0_82 = arith.constant 0 : index
      %c0_83 = arith.constant 0 : index
      %c0_84 = arith.constant 0 : index
      %172 = vector.load %arg20[%c0_82, %c0_83, %c0_84] : memref<4x8x8xbf16, #tpu.memory_space<vmem>>, vector<4x8x8xbf16>
      tpu.vector_store %arg20[%c0_82, %c0_83, %c0_84], %171 {strides = array<i32>} : memref<4x8x8xbf16, #tpu.memory_space<vmem>>, vector<4x8x8xbf16>,
      %173 = vector.extract_strided_slice %160 {offsets = [0, 32], sizes = [8, 32], strides = [1, 1]} : vector<8x64xf32> to vector<8x32xf32>
      %174 = vector.extract_strided_slice %173 {offsets = [0, 0], sizes = [8, 8], strides = [1, 1]} : vector<8x32xf32> to vector<8x8xf32>
      %175 = vector.extract_strided_slice %173 {offsets = [0, 8], sizes = [8, 8], strides = [1, 1]} : vector<8x32xf32> to vector<8x8xf32>
      %176 = vector.extract_strided_slice %173 {offsets = [0, 16], sizes = [8, 8], strides = [1, 1]} : vector<8x32xf32> to vector<8x8xf32>
      %177 = vector.extract_strided_slice %173 {offsets = [0, 24], sizes = [8, 8], strides = [1, 1]} : vector<8x32xf32> to vector<8x8xf32>
      %178 = vector.shape_cast %174 : vector<8x8xf32> to vector<1x8x8xf32>
      %179 = vector.shape_cast %175 : vector<8x8xf32> to vector<1x8x8xf32>
      %180 = vector.shape_cast %176 : vector<8x8xf32> to vector<1x8x8xf32>
      %181 = vector.shape_cast %177 : vector<8x8xf32> to vector<1x8x8xf32>
      %182 = tpu.concatenate %178, %179, %180, %181 in 0 : vector<1x8x8xf32>, vector<1x8x8xf32>, vector<1x8x8xf32>, vector<1x8x8xf32> -> vector<4x8x8xf32>
      %183 = arith.truncf %182 : vector<4x8x8xf32> to vector<4x8x8xbf16>
      %c0_85 = arith.constant 0 : index
      %c0_86 = arith.constant 0 : index
      %c0_87 = arith.constant 0 : index
      %184 = vector.load %arg21[%c0_85, %c0_86, %c0_87] : memref<4x8x8xbf16, #tpu.memory_space<vmem>>, vector<4x8x8xbf16>
      tpu.vector_store %arg21[%c0_85, %c0_86, %c0_87], %183 {strides = array<i32>} : memref<4x8x8xbf16, #tpu.memory_space<vmem>>, vector<4x8x8xbf16>,
    } else {
    }
    %c0 = arith.constant 0 : index
    %c0_1 = arith.constant 0 : index
    %c0_2 = arith.constant 0 : index
    %3 = vector.load %arg3[%c0, %c0_1, %c0_2] : memref<1x8x32xf32, #tpu.memory_space<vmem>>, vector<1x8x32xf32>
    %4 = vector.shape_cast %3 : vector<1x8x32xf32> to vector<8x32xf32>
    %c0_3 = arith.constant 0 : index
    %c0_4 = arith.constant 0 : index
    %5 = vector.load %arg5[%c0_3, %c0_4] : memref<1x32xf32, #tpu.memory_space<vmem>>, vector<1x32xf32>
    %c0_5 = arith.constant 0 : index
    %c0_6 = arith.constant 0 : index
    %6 = vector.load %arg6[%c0_5, %c0_6] : memref<1x32xf32, #tpu.memory_space<vmem>>, vector<1x32xf32>
    %cst = arith.constant dense<0.000000e+00> : vector<8xf32>
    %7 = vector.multi_reduction <add>, %4, %cst [1] : vector<8x32xf32> to vector<8xf32>
    %8 = vector.shape_cast %7 : vector<8xf32> to vector<8x1xf32>
    %cst_7 = arith.constant 3.200000e+01 : f32
    %9 = vector.broadcast %cst_7 : f32 to vector<8x1xf32>
    %10 = arith.divf %8, %9 : vector<8x1xf32>
    %11 = vector.broadcast %10 : vector<8x1xf32> to vector<8x32xf32>
    %12 = arith.subf %4, %11 : vector<8x32xf32>
    %13 = arith.mulf %12, %12 : vector<8x32xf32>
    %cst_8 = arith.constant dense<0.000000e+00> : vector<8xf32>
    %14 = vector.multi_reduction <add>, %13, %cst_8 [1] : vector<8x32xf32> to vector<8xf32>
    %15 = vector.shape_cast %14 : vector<8xf32> to vector<8x1xf32>
    %cst_9 = arith.constant 3.200000e+01 : f32
    %16 = vector.broadcast %cst_9 : f32 to vector<8x1xf32>
    %17 = arith.divf %15, %16 : vector<8x1xf32>
    %18 = vector.broadcast %10 : vector<8x1xf32> to vector<8x32xf32>
    %19 = arith.subf %4, %18 : vector<8x32xf32>
    %cst_10 = arith.constant 9.99999997E-7 : f32
    %20 = vector.broadcast %cst_10 : f32 to vector<8x1xf32>
    %21 = arith.addf %17, %20 : vector<8x1xf32>
    %22 = math.rsqrt %21 : vector<8x1xf32>
    %23 = vector.broadcast %22 : vector<8x1xf32> to vector<8x32xf32>
    %24 = arith.mulf %19, %23 : vector<8x32xf32>
    %25 = vector.broadcast %5 : vector<1x32xf32> to vector<8x32xf32>
    %26 = arith.mulf %24, %25 : vector<8x32xf32>
    %27 = vector.broadcast %6 : vector<1x32xf32> to vector<8x32xf32>
    %28 = arith.addf %26, %27 : vector<8x32xf32>
    %29 = arith.truncf %28 : vector<8x32xf32> to vector<8x32xbf16>
    %c0_11 = arith.constant 0 : index
    %c0_12 = arith.constant 0 : index
    %30 = vector.load %arg7[%c0_11, %c0_12] : memref<32x32xbf16, #tpu.memory_space<vmem>>, vector<32x32xbf16>
    %cst_13 = arith.constant dense<0.000000e+00> : vector<8x32xf32>
    %31 = tpu.matmul %29, %30, %cst_13 {dimension_numbers = #tpu.dot_dimension_numbers<[1], [0], [0], [1], [0, 0, 1, 1], [], []>} : vector<8x32xbf16>, vector<32x32xbf16>, vector<8x32xf32> -> vector<8x32xf32>
    %c0_14 = arith.constant 0 : index
    %c0_15 = arith.constant 0 : index
    %32 = vector.load %arg8[%c0_14, %c0_15] : memref<1x32xf32, #tpu.memory_space<vmem>>, vector<1x32xf32>
    %33 = vector.broadcast %32 : vector<1x32xf32> to vector<8x32xf32>
    %34 = arith.addf %31, %33 : vector<8x32xf32>
    %cst_16 = arith.constant 0.353553385 : f32
    %35 = vector.broadcast %cst_16 : f32 to vector<8x32xf32>
    %36 = arith.mulf %34, %35 : vector<8x32xf32>
    %37 = vector.extract_strided_slice %36 {offsets = [0, 0], sizes = [8, 8], strides = [1, 1]} : vector<8x32xf32> to vector<8x8xf32>
    %38 = vector.extract_strided_slice %36 {offsets = [0, 8], sizes = [8, 8], strides = [1, 1]} : vector<8x32xf32> to vector<8x8xf32>
    %39 = vector.extract_strided_slice %36 {offsets = [0, 16], sizes = [8, 8], strides = [1, 1]} : vector<8x32xf32> to vector<8x8xf32>
    %40 = vector.extract_strided_slice %36 {offsets = [0, 24], sizes = [8, 8], strides = [1, 1]} : vector<8x32xf32> to vector<8x8xf32>
    %41 = vector.shape_cast %37 : vector<8x8xf32> to vector<1x8x8xf32>
    %42 = vector.shape_cast %38 : vector<8x8xf32> to vector<1x8x8xf32>
    %43 = vector.shape_cast %39 : vector<8x8xf32> to vector<1x8x8xf32>
    %44 = vector.shape_cast %40 : vector<8x8xf32> to vector<1x8x8xf32>
    %45 = tpu.concatenate %41, %42, %43, %44 in 0 : vector<1x8x8xf32>, vector<1x8x8xf32>, vector<1x8x8xf32>, vector<1x8x8xf32> -> vector<4x8x8xf32>
    %46 = arith.truncf %45 : vector<4x8x8xf32> to vector<4x8x8xbf16>
    %c0_17 = arith.constant 0 : index
    %c0_18 = arith.constant 0 : index
    %c0_19 = arith.constant 0 : index
    %47 = vector.load %arg20[%c0_17, %c0_18, %c0_19] : memref<4x8x8xbf16, #tpu.memory_space<vmem>>, vector<4x8x8xbf16>
    %c0_20 = arith.constant 0 : index
    %c0_21 = arith.constant 0 : index
    %c0_22 = arith.constant 0 : index
    %48 = vector.load %arg21[%c0_20, %c0_21, %c0_22] : memref<4x8x8xbf16, #tpu.memory_space<vmem>>, vector<4x8x8xbf16>
    %c0_23 = arith.constant 0 : index
    %c0_24 = arith.constant 0 : index
    %c0_25 = arith.constant 0 : index
    %49 = vector.load %arg4[%c0_23, %c0_24, %c0_25] : memref<1x1x8xf32, #tpu.memory_space<vmem>>, vector<1x1x8xf32>
    %50 = vector.shape_cast %49 : vector<1x1x8xf32> to vector<1x8xf32>
    %cst_26 = arith.constant 1.000000e+00 : f32
    %51 = vector.broadcast %cst_26 : f32 to vector<1x8xf32>
    %52 = arith.subf %51, %50 : vector<1x8xf32>
    %cst_27 = arith.constant -1.000000e+04 : f32
    %53 = vector.broadcast %cst_27 : f32 to vector<1x8xf32>
    %54 = arith.mulf %53, %52 : vector<1x8xf32>
    "tpu.trace_start"() <{level = 10 : i32, message = "hqw,hkw->hqk"}> : () -> ()
    %cst_28 = arith.constant dense<0.000000e+00> : vector<4x8x8xf32>
    %55 = tpu.matmul %46, %47, %cst_28 {dimension_numbers = #tpu.dot_dimension_numbers<[2], [2], [1], [1], [0, 0, 0, 1, 1, 1], [0], [0]>} : vector<4x8x8xbf16>, vector<4x8x8xbf16>, vector<4x8x8xf32> -> vector<4x8x8xf32>
    "tpu.trace_stop"() : () -> ()
    %56 = vector.shape_cast %54 : vector<1x8xf32> to vector<1x1x8xf32>
    %57 = vector.broadcast %56 : vector<1x1x8xf32> to vector<4x8x8xf32>
    %58 = arith.addf %55, %57 : vector<4x8x8xf32>
    %cst_29 = arith.constant dense<0xFF800000> : vector<4x8xf32>
    %59 = vector.multi_reduction <maximumf>, %58, %cst_29 [2] : vector<4x8x8xf32> to vector<4x8xf32>
    %60 = vector.shape_cast %59 : vector<4x8xf32> to vector<4x8x1xf32>
    %61 = vector.broadcast %60 : vector<4x8x1xf32> to vector<4x8x8xf32>
    %62 = arith.subf %58, %61 : vector<4x8x8xf32>
    %63 = math.exp %62 : vector<4x8x8xf32>
    %cst_30 = arith.constant dense<0.000000e+00> : vector<4x8xf32>
    %64 = vector.multi_reduction <add>, %63, %cst_30 [2] : vector<4x8x8xf32> to vector<4x8xf32>
    %65 = vector.shape_cast %64 : vector<4x8xf32> to vector<4x8x1xf32>
    %66 = tpu.reciprocal %65 {approx = true} : vector<4x8x1xf32> -> vector<4x8x1xf32>
    %67 = vector.broadcast %66 : vector<4x8x1xf32> to vector<4x8x8xf32>
    %68 = arith.mulf %63, %67 : vector<4x8x8xf32>
    %69 = arith.truncf %68 : vector<4x8x8xf32> to vector<4x8x8xbf16>
    "tpu.trace_start"() <{level = 10 : i32, message = "hqk,hkw->hqw"}> : () -> ()
    %cst_31 = arith.constant dense<0.000000e+00> : vector<4x8x8xf32>
    %70 = tpu.matmul %69, %48, %cst_31 {dimension_numbers = #tpu.dot_dimension_numbers<[2], [1], [1], [2], [0, 0, 0, 1, 1, 2], [0], [0]>} : vector<4x8x8xbf16>, vector<4x8x8xbf16>, vector<4x8x8xf32> -> vector<4x8x8xf32>
    "tpu.trace_stop"() : () -> ()
    %71 = arith.truncf %70 : vector<4x8x8xf32> to vector<4x8x8xbf16>
    %c0_32 = arith.constant 0 : index
    %c0_33 = arith.constant 0 : index
    %c0_34 = arith.constant 0 : index
    %72 = vector.load %arg11[%c0_32, %c0_33, %c0_34] : memref<4x8x32xbf16, #tpu.memory_space<vmem>>, vector<4x8x32xbf16>
    "tpu.trace_start"() <{level = 10 : i32, message = "hqw,hwd->hqd"}> : () -> ()
    %cst_35 = arith.constant dense<0.000000e+00> : vector<4x8x32xf32>
    %73 = tpu.matmul %71, %72, %cst_35 {dimension_numbers = #tpu.dot_dimension_numbers<[2], [1], [1], [2], [0, 0, 0, 1, 1, 2], [0], [0]>} : vector<4x8x8xbf16>, vector<4x8x32xbf16>, vector<4x8x32xf32> -> vector<4x8x32xf32>
    "tpu.trace_stop"() : () -> ()
    %cst_36 = arith.constant dense<0.000000e+00> : vector<8x32xf32>
    %74 = vector.multi_reduction <add>, %73, %cst_36 [0] : vector<4x8x32xf32> to vector<8x32xf32>
    %c0_37 = arith.constant 0 : index
    %c0_38 = arith.constant 0 : index
    %75 = vector.load %arg12[%c0_37, %c0_38] : memref<1x32xf32, #tpu.memory_space<vmem>>, vector<1x32xf32>
    %76 = vector.broadcast %75 : vector<1x32xf32> to vector<8x32xf32>
    %77 = arith.addf %74, %76 : vector<8x32xf32>
    %78 = arith.addf %4, %77 : vector<8x32xf32>
    %c0_39 = arith.constant 0 : index
    %c0_40 = arith.constant 0 : index
    %79 = vector.load %arg13[%c0_39, %c0_40] : memref<1x32xf32, #tpu.memory_space<vmem>>, vector<1x32xf32>
    %c0_41 = arith.constant 0 : index
    %c0_42 = arith.constant 0 : index
    %80 = vector.load %arg14[%c0_41, %c0_42] : memref<1x32xf32, #tpu.memory_space<vmem>>, vector<1x32xf32>
    %cst_43 = arith.constant dense<0.000000e+00> : vector<8xf32>
    %81 = vector.multi_reduction <add>, %78, %cst_43 [1] : vector<8x32xf32> to vector<8xf32>
    %82 = vector.shape_cast %81 : vector<8xf32> to vector<8x1xf32>
    %cst_44 = arith.constant 3.200000e+01 : f32
    %83 = vector.broadcast %cst_44 : f32 to vector<8x1xf32>
    %84 = arith.divf %82, %83 : vector<8x1xf32>
    %85 = vector.broadcast %84 : vector<8x1xf32> to vector<8x32xf32>
    %86 = arith.subf %78, %85 : vector<8x32xf32>
    %87 = arith.mulf %86, %86 : vector<8x32xf32>
    %cst_45 = arith.constant dense<0.000000e+00> : vector<8xf32>
    %88 = vector.multi_reduction <add>, %87, %cst_45 [1] : vector<8x32xf32> to vector<8xf32>
    %89 = vector.shape_cast %88 : vector<8xf32> to vector<8x1xf32>
    %cst_46 = arith.constant 3.200000e+01 : f32
    %90 = vector.broadcast %cst_46 : f32 to vector<8x1xf32>
    %91 = arith.divf %89, %90 : vector<8x1xf32>
    %92 = vector.broadcast %84 : vector<8x1xf32> to vector<8x32xf32>
    %93 = arith.subf %78, %92 : vector<8x32xf32>
    %cst_47 = arith.constant 9.99999997E-7 : f32
    %94 = vector.broadcast %cst_47 : f32 to vector<8x1xf32>
    %95 = arith.addf %91, %94 : vector<8x1xf32>
    %96 = math.rsqrt %95 : vector<8x1xf32>
    %97 = vector.broadcast %96 : vector<8x1xf32> to vector<8x32xf32>
    %98 = arith.mulf %93, %97 : vector<8x32xf32>
    %99 = vector.broadcast %79 : vector<1x32xf32> to vector<8x32xf32>
    %100 = arith.mulf %98, %99 : vector<8x32xf32>
    %101 = vector.broadcast %80 : vector<1x32xf32> to vector<8x32xf32>
    %102 = arith.addf %100, %101 : vector<8x32xf32>
    %103 = arith.truncf %102 : vector<8x32xf32> to vector<8x32xbf16>
    %c0_48 = arith.constant 0 : index
    %c0_49 = arith.constant 0 : index
    %104 = vector.load %arg15[%c0_48, %c0_49] : memref<32x64xbf16, #tpu.memory_space<vmem>>, vector<32x64xbf16>
    %cst_50 = arith.constant dense<0.000000e+00> : vector<8x64xf32>
    %105 = tpu.matmul %103, %104, %cst_50 {dimension_numbers = #tpu.dot_dimension_numbers<[1], [0], [0], [1], [0, 0, 1, 1], [], []>} : vector<8x32xbf16>, vector<32x64xbf16>, vector<8x64xf32> -> vector<8x64xf32>
    %c0_51 = arith.constant 0 : index
    %c0_52 = arith.constant 0 : index
    %106 = vector.load %arg16[%c0_51, %c0_52] : memref<1x64xf32, #tpu.memory_space<vmem>>, vector<1x64xf32>
    %107 = vector.broadcast %106 : vector<1x64xf32> to vector<8x64xf32>
    %108 = arith.addf %105, %107 : vector<8x64xf32>
    %cst_53 = arith.constant 5.000000e-01 : f32
    %109 = vector.broadcast %cst_53 : f32 to vector<8x64xf32>
    %110 = arith.mulf %109, %108 : vector<8x64xf32>
    %cst_54 = arith.constant 2.000000e+00 : f32
    %111 = math.sqrt %cst_54 : f32
    %cst_55 = arith.constant 1.000000e+00 : f32
    %112 = arith.divf %cst_55, %111 : f32
    %113 = vector.broadcast %112 : f32 to vector<8x64xf32>
    %114 = arith.mulf %108, %113 : vector<8x64xf32>
    %115 = math.erf %114 : vector<8x64xf32>
    %cst_56 = arith.constant 1.000000e+00 : f32
    %116 = vector.broadcast %cst_56 : f32 to vector<8x64xf32>
    %117 = arith.addf %116, %115 : vector<8x64xf32>
    %118 = arith.mulf %110, %117 : vector<8x64xf32>
    %119 = arith.truncf %118 : vector<8x64xf32> to vector<8x64xbf16>
    %c0_57 = arith.constant 0 : index
    %c0_58 = arith.constant 0 : index
    %120 = vector.load %arg17[%c0_57, %c0_58] : memref<64x32xbf16, #tpu.memory_space<vmem>>, vector<64x32xbf16>
    %cst_59 = arith.constant dense<0.000000e+00> : vector<8x32xf32>
    %121 = tpu.matmul %119, %120, %cst_59 {dimension_numbers = #tpu.dot_dimension_numbers<[1], [0], [0], [1], [0, 0, 1, 1], [], []>} : vector<8x64xbf16>, vector<64x32xbf16>, vector<8x32xf32> -> vector<8x32xf32>
    %c0_60 = arith.constant 0 : index
    %c0_61 = arith.constant 0 : index
    %122 = vector.load %arg18[%c0_60, %c0_61] : memref<1x32xf32, #tpu.memory_space<vmem>>, vector<1x32xf32>
    %123 = vector.broadcast %122 : vector<1x32xf32> to vector<8x32xf32>
    %124 = arith.addf %121, %123 : vector<8x32xf32>
    %125 = arith.addf %78, %124 : vector<8x32xf32>
    %c0_62 = arith.constant 0 : index
    %c0_63 = arith.constant 0 : index
    %c0_64 = arith.constant 0 : index
    %126 = vector.load %arg19[%c0_62, %c0_63, %c0_64] : memref<1x8x32xf32, #tpu.memory_space<vmem>>, vector<1x8x32xf32>
    %127 = vector.shape_cast %126 : vector<1x8x32xf32> to vector<8x32xf32>
    %128 = vector.shape_cast %125 : vector<8x32xf32> to vector<1x8x32xf32>
    tpu.vector_store %arg19[%c0_62, %c0_63, %c0_64], %128 {strides = array<i32>} : memref<1x8x32xf32, #tpu.memory_space<vmem>>, vector<1x8x32xf32>,
    return
  }
  func.func @transform_0(%arg0: i32, %arg1: i32) -> (i32, i32, i32) {
    %c0_i32 = arith.constant 0 : i32
    %c0_i32_0 = arith.constant 0 : i32
    %c0_i32_1 = arith.constant 0 : i32
    return %arg0, %c0_i32, %c0_i32_0 : i32, i32, i32
  }
  func.func @transform_1(%arg0: i32, %arg1: i32) -> (i32, i32, i32) {
    %c0_i32 = arith.constant 0 : i32
    %c0_i32_0 = arith.constant 0 : i32
    return %arg0, %arg1, %c0_i32 : i32, i32, i32
  }
  func.func @transform_2(%arg0: i32, %arg1: i32) -> (i32, i32, i32) {
    %c0_i32 = arith.constant 0 : i32
    %c0_i32_0 = arith.constant 0 : i32
    %c0_i32_1 = arith.constant 0 : i32
    return %arg0, %c0_i32, %c0_i32_0 : i32, i32, i32
  }
  func.func @transform_3(%arg0: i32, %arg1: i32) -> (i32, i32) {
    %c0_i32 = arith.constant 0 : i32
    %c0_i32_0 = arith.constant 0 : i32
    %c0_i32_1 = arith.constant 0 : i32
    return %c0_i32, %c0_i32_0 : i32, i32
  }
  func.func @transform_4(%arg0: i32, %arg1: i32) -> (i32, i32) {
    %c0_i32 = arith.constant 0 : i32
    %c0_i32_0 = arith.constant 0 : i32
    %c0_i32_1 = arith.constant 0 : i32
    return %c0_i32, %c0_i32_0 : i32, i32
  }
  func.func @transform_5(%arg0: i32, %arg1: i32) -> (i32, i32) {
    %c0_i32 = arith.constant 0 : i32
    %c0_i32_0 = arith.constant 0 : i32
    %c0_i32_1 = arith.constant 0 : i32
    return %c0_i32, %c0_i32_0 : i32, i32
  }
  func.func @transform_6(%arg0: i32, %arg1: i32) -> (i32, i32) {
    %c0_i32 = arith.constant 0 : i32
    %c0_i32_0 = arith.constant 0 : i32
    %c0_i32_1 = arith.constant 0 : i32
    return %c0_i32, %c0_i32_0 : i32, i32
  }
  func.func @transform_7(%arg0: i32, %arg1: i32) -> (i32, i32) {
    %c0_i32 = arith.constant 0 : i32
    %c0_i32_0 = arith.constant 0 : i32
    %c0_i32_1 = arith.constant 0 : i32
    return %c0_i32, %c0_i32_0 : i32, i32
  }
  func.func @transform_8(%arg0: i32, %arg1: i32) -> (i32, i32) {
    %c0_i32 = arith.constant 0 : i32
    %c0_i32_0 = arith.constant 0 : i32
    %c0_i32_1 = arith.constant 0 : i32
    return %c0_i32, %c0_i32_0 : i32, i32
  }
  func.func @transform_9(%arg0: i32, %arg1: i32) -> (i32, i32, i32) {
    %c0_i32 = arith.constant 0 : i32
    %c0_i32_0 = arith.constant 0 : i32
    %c0_i32_1 = arith.constant 0 : i32
    %c0_i32_2 = arith.constant 0 : i32
    return %c0_i32, %c0_i32_0, %c0_i32_1 : i32, i32, i32
  }
  func.func @transform_10(%arg0: i32, %arg1: i32) -> (i32, i32) {
    %c0_i32 = arith.constant 0 : i32
    %c0_i32_0 = arith.constant 0 : i32
    %c0_i32_1 = arith.constant 0 : i32
    return %c0_i32, %c0_i32_0 : i32, i32
  }
  func.func @transform_11(%arg0: i32, %arg1: i32) -> (i32, i32) {
    %c0_i32 = arith.constant 0 : i32
    %c0_i32_0 = arith.constant 0 : i32
    %c0_i32_1 = arith.constant 0 : i32
    return %c0_i32, %c0_i32_0 : i32, i32
  }
  func.func @transform_12(%arg0: i32, %arg1: i32) -> (i32, i32) {
    %c0_i32 = arith.constant 0 : i32
    %c0_i32_0 = arith.constant 0 : i32
    %c0_i32_1 = arith.constant 0 : i32
    return %c0_i32, %c0_i32_0 : i32, i32
  }
  func.func @transform_13(%arg0: i32, %arg1: i32) -> (i32, i32) {
    %c0_i32 = arith.constant 0 : i32
    %c0_i32_0 = arith.constant 0 : i32
    %c0_i32_1 = arith.constant 0 : i32
    return %c0_i32, %c0_i32_0 : i32, i32
  }
  func.func @transform_14(%arg0: i32, %arg1: i32) -> (i32, i32) {
    %c0_i32 = arith.constant 0 : i32
    %c0_i32_0 = arith.constant 0 : i32
    %c0_i32_1 = arith.constant 0 : i32
    return %c0_i32, %c0_i32_0 : i32, i32
  }
  func.func @transform_15(%arg0: i32, %arg1: i32) -> (i32, i32) {
    %c0_i32 = arith.constant 0 : i32
    %c0_i32_0 = arith.constant 0 : i32
    %c0_i32_1 = arith.constant 0 : i32
    return %c0_i32, %c0_i32_0 : i32, i32
  }
  func.func @transform_16(%arg0: i32, %arg1: i32) -> (i32, i32) {
    %c0_i32 = arith.constant 0 : i32
    %c0_i32_0 = arith.constant 0 : i32
    %c0_i32_1 = arith.constant 0 : i32
    return %c0_i32, %c0_i32_0 : i32, i32
  }
  func.func @transform_17(%arg0: i32, %arg1: i32) -> (i32, i32, i32) {
    %c0_i32 = arith.constant 0 : i32
    %c0_i32_0 = arith.constant 0 : i32
    return %arg0, %arg1, %c0_i32 : i32, i32, i32
  }
}

</mosaic_0001>

<bundles_post_ra>
// kernel: tpu_custom_call.1
= control target key start
LH: loop header
LB: loop body
LE: loop exit
PB: predicated region body
PF: predicated region fallthrough
CT: control target
= control target key end

     0   :  { %s3153_s0 = inlined_call_operand.vmem [shape: f32[2,8,32], index: 0, kind: input, shape index: {}]   ;;  %s3154_s1 = inlined_call_operand.vmem [shape: f32[2,8,32], index: 1, kind: input, shape index: {}]   ;;  %s3155_s2 = inlined_call_operand.hbm [shape: f32[2,1,8], index: 2, kind: input, shape index: {}]   ;;  %s3156_s3 = inlined_call_operand.hbm [shape: f32[1,32], index: 3, kind: input, shape index: {}]   ;;  %s3157_s4 = inlined_call_operand.hbm [shape: f32[1,32], index: 4, kind: input, shape index: {}]   ;;  %s3158_s5 = inlined_call_operand.vmem [shape: bf16[32,32], index: 5, kind: input, shape index: {}]   ;;  %s3159_s6 = inlined_call_operand.hbm [shape: f32[1,32], index: 6, kind: input, shape index: {}]   ;;  %s3160_s7 = inlined_call_operand.hbm [shape: bf16[32,64], index: 7, kind: input, shape index: {}]   ;;  %s3161_s8 = inlined_call_operand.hbm [shape: f32[1,64], index: 8, kind: input, shape index: {}]   ;;  %s3162_s9 = inlined_call_operand.vmem [shape: bf16[4,8,32], index: 9, kind: input, shape index: {}]   ;;  %s3163_s10 = inlined_call_operand.vmem [shape: f32[1,32], index: 10, kind: input, shape index: {}]   ;;  %s3164_s11 = inlined_call_operand.vmem [shape: f32[1,32], index: 11, kind: input, shape index: {}]   ;;  %s3165_s12 = inlined_call_operand.vmem [shape: f32[1,32], index: 12, kind: input, shape index: {}]   ;;  %s3166_s13 = inlined_call_operand.hbm [shape: bf16[32,64], index: 13, kind: input, shape index: {}]   ;;  %s3167_s14 = inlined_call_operand.vmem [shape: f32[1,64], index: 14, kind: input, shape index: {}]   ;;  %s3168_s15 = inlined_call_operand.vmem [shape: bf16[64,32], index: 15, kind: input, shape index: {}]   ;;  %s3169_s16 = inlined_call_operand.vmem [shape: f32[1,32], index: 16, kind: input, shape index: {}]   ;;  %s3170_s17 = inlined_call_operand.hbm [shape: f32[2,8,32], index: 17, kind: output, shape index: {}]  }
   0x1   :  { %3178 = sst [smem:[#allocation23_spill]] %s3153_s0 }
   0x2   :  { %3179 = sst [smem:[#allocation24_spill]] %s3154_s1 }
   0x3   :  { %3180 = sst [smem:[#allocation25_spill]] %s3156_s3 }
   0x4   :  { %3181 = sst [smem:[#allocation26_spill]] %s3157_s4 }
   0x5   :  { %3182 = sst [smem:[#allocation27_spill]] %s3159_s6 }
   0x6   :  { %3183 = sst [smem:[#allocation28_spill]] %s3160_s7 }
   0x7   :  { %3184 = sst [smem:[#allocation29_spill]] %s3161_s8 }
   0x8   :  { %3185 = sst [smem:[#allocation30_spill]] %s3166_s13 }
   0x9   :  { %3186 = sst [smem:[#allocation31_spill]] %s3167_s14 }
   0xa   :  { %3187 = sst [smem:[#allocation32_spill]] %s3168_s15 }
   0xb   :  { %3188 = sst [smem:[#allocation33_spill]] %s3169_s16 }
   0xc   :  { %3189 = sst [smem:[#allocation34_spill]] %s3170_s17 }
   0xd   :  { %22 = vsyncpa [#allocation5], 0 }
   0xe   :  { %24 = vsyncpa [#allocation5 + $0x1], 0 }
   0xf   :  { %25 = vsyncpa [#allocation8], 0 }
  0x10   :  { %26 = vsyncpa [#allocation11], 0 }
  0x11   :  { %27 = vsyncpa [#allocation14], 0 }
  0x12   :  { %28 = vsyncpa [#allocation6], 0 }
  0x13   :  { %30 = vsyncpa [#allocation6 + $0x1], 0  ;;  %s2734_s24 = smov 0   ;;  %s2736_s25 = smov 0  }
  0x14   :  { %s2738_s26 = smov 0   ;;  %s2740_s27 = smov 0  }
  0x15   :  { %s2742_s28 = smov 0   ;;  %s2744_s29 = smov 0  }
  0x16 LB: > { %s3171_s0 = sadd.s32 4294967295, %s2626_s29   ;;  %p1971_p0 = scmp.ge.s32.totalorder %s2626_s29, 1  ;;  %s2626_s29 = sphi %s2744_s29, %s36_s29   ;;  %s2622_s28 = sphi %s2742_s28, %s3222_s28   ;;  %s2618_s27 = sphi %s2740_s27, %s3221_s27   ;;  %s2614_s26 = sphi %s2738_s26, %s3220_s26   ;;  %s2610_s25 = sphi %s2736_s25, %s3219_s25   ;;  %s2606_s24 = sphi %s2734_s24, %s3218_s24  }
  0x17   : > { %p2768_p1 = scmp.eq.s32.totalorder %s3171_s0, 0  ;;  %p455_p2 = scmp.lt.s32.totalorder %s2626_s29, 3 }
  0x18   : > { %s2628_s19 = smov [#allocation7]   ;;  %s2629_s20 = smov [#allocation10]  }
  0x19   : > { %s3190_s30 = scalar_select %p2768_p1, 1, 0 }
  0x1a   : > { %p2773_p3 = pnand %p1971_p0, %p455_p2  ;;  %s468_s1 = sshll.u32 %s2628_s19, 4  ;;  %s469_s1 = int_to_ptr.vmem [resolvable:$true] %s468_s1 }
  0x1b   : > { %s493_s21 = sshll.u32 %s2629_s20, 4  ;;  %s2630_s23 = smov [#allocation13]   ;;  %s494_s21 = int_to_ptr.vmem [resolvable:$true] %s493_s21 }
  0x1c   : > { %s3191_s18 = scalar_select %p2773_p3, 1, 0 }
  0x1d   : > { %p2213_p5 = pneg %p2773_p3  ;;  %s517_s0 = sshll.u32 %s2630_s23, 4  ;;  %s2786_s0 = int_to_ptr.vmem [resolvable:$true] %s517_s0 }
  0x1e   : > { %s2361_s17 = scalar_lea.vmem %s469_s1, 16  ;;  %s2368_s20 = scalar_lea.vmem %s469_s1, 32 }
  0x1f   : > { %p2782_p6 = pnand %p2213_p5, %p2768_p1  ;;  %p2362_p8 = scmp.ne.s32.totalorder %s469_s1, %s2361_s17 }
  0x20   : > { %p2369_p11 = scmp.lt.s32.totalorder %s469_s1, %s469_s1  ;;  %p2370_p12 = scmp.lt.s32.totalorder %s2368_s20, %s2361_s17 }
  0x21   : > { %p2790_p7 = pneg %p2782_p6 }
  0x22   : > { %p2371_p13 = por %p2370_p12, %p2369_p11 }
  0x23   : > { %p2364_p9 = pnand %p2362_p8, %p2790_p7 }
  0x25   : > { %p2365_p10 = pneg %p2364_p9 }
  0x27   : > { %p2372_p0 = pnand %p2371_p13, %p2365_p10 }
  0x29   : > { %2375 = shalt.err (!%p2372_p0)
}
  0x2a   : > { %s3194_s3 = sld [smem:[#allocation25_spill]]  ;;  %s2387_s14 = scalar_lea.vmem %s494_s21, 16 }
  0x2b   : > { %p2388_p2 = scmp.ne.s32.totalorder %s494_s21, %s2387_s14  ;;  %s2394_s15 = scalar_lea.vmem %s494_s21, 32 }
  0x2c   : > { %p2395_p8 = scmp.lt.s32.totalorder %s494_s21, %s494_s21  ;;  %p2396_p9 = scmp.lt.s32.totalorder %s2394_s15, %s2387_s14 }
  0x2d   : > { %p2390_p5 = pnand %p2388_p2, %p2790_p7 }
  0x2e   : > { %p2397_p3 = por %p2396_p9, %p2395_p8 }
  0x2f   : > { %p2391_p4 = pneg %p2390_p5 }
  0x30   : > { %2216 = dma.hbm_to_vmem [thread:$0]  (!%p2782_p6), %s3194_s3, 16, %s469_s1, [#allocation8]  }
  0x31   : > { %p2398_p1 = pnand %p2397_p3, %p2391_p4 }
  0x33   : > { %2401 = shalt.err (!%p2398_p1)
}
  0x34   : > { %s3195_s6 = sld [smem:[#allocation27_spill]]  ;;  %s2413_s16 = scalar_lea.vmem %s2786_s0, 16 }
  0x35   : > { %p2414_p10 = scmp.ne.s32.totalorder %s2786_s0, %s2413_s16  ;;  %s2420_s14 = scalar_lea.vmem %s2786_s0, 32 }
  0x36   : > { %p2421_p3 = scmp.lt.s32.totalorder %s2786_s0, %s2786_s0  ;;  %p2422_p1 = scmp.lt.s32.totalorder %s2420_s14, %s2413_s16 }
  0x37   : > { %p2416_p11 = pnand %p2414_p10, %p2790_p7 }
  0x38   : > { %p2423_p4 = por %p2422_p1, %p2421_p3 }
  0x39   : > { %p2417_p12 = pneg %p2416_p11 }
  0x3a   : > { %2222 = dma.hbm_to_vmem [thread:$0]  (!%p2782_p6), %s3195_s6, 16, %s494_s21, [#allocation11]  }
  0x3b   : > { %p2424_p13 = pnand %p2423_p4, %p2417_p12 }
  0x3d   : > { %2427 = shalt.err (!%p2424_p13)
}
  0x3e   : > { %s3196_s8 = sld [smem:[#allocation29_spill]]  ;;  %s2631_s21 = smov [#allocation9]  }
  0x3f   : > { %s479_s23 = sshll.u32 %s2631_s21, 4  ;;  %s2632_s17 = smov [#allocation12]   ;;  %s480_s23 = int_to_ptr.vmem [resolvable:$true] %s479_s23 }
  0x40   : > { %s503_s20 = sshll.u32 %s2632_s17, 4  ;;  %s2439_s3 = scalar_lea.vmem %s480_s23, 16  ;;  %s504_s20 = int_to_ptr.vmem [resolvable:$true] %s503_s20 }
  0x41   : > { %p2440_p0 = scmp.ne.s32.totalorder %s480_s23, %s2439_s3  ;;  %s2446_s16 = scalar_lea.vmem %s480_s23, 32 }
  0x42   : > { %p2447_p8 = scmp.lt.s32.totalorder %s480_s23, %s480_s23  ;;  %p2448_p9 = scmp.lt.s32.totalorder %s2446_s16, %s2439_s3 }
  0x43   : > { %p2442_p2 = pnand %p2440_p0, %p2790_p7 }
  0x44   : > { %2228 = dma.hbm_to_vmem [thread:$0]  (!%p2782_p6), %s3196_s8, 16, %s2786_s0, [#allocation14]  }
  0x45   : > { %p2443_p5 = pneg %p2442_p2  ;;  %p2449_p10 = por %p2448_p9, %p2447_p8 }
  0x47   : > { %p2450_p11 = pnand %p2449_p10, %p2443_p5 }
  0x49   : > { %2453 = shalt.err (!%p2450_p11)
}
  0x4a   : > { %s3197_s4 = sld [smem:[#allocation26_spill]]  ;;  %s2465_s15 = scalar_lea.vmem %s504_s20, 256 }
  0x4b   : > { %p2466_p12 = scmp.ne.s32.totalorder %s504_s20, %s2465_s15  ;;  %p2473_p4 = scmp.lt.s32.totalorder %s504_s20, %s504_s20 }
  0x4c   : > { %p2474_p13 = scmp.lt.s32.totalorder %s2465_s15, %s2465_s15 }
  0x4d   : > { %p2468_p3 = pnand %p2466_p12, %p2790_p7 }
  0x4e   : > { %p2475_p0 = por %p2474_p13, %p2473_p4 }
  0x4f   : > { %p2469_p1 = pneg %p2468_p3 }
  0x50   : > { %2219 = dma.hbm_to_vmem [thread:$0]  (!%p2782_p6), %s3197_s4, 16, %s480_s23, [#allocation8]  }
  0x51   : > { %p2476_p2 = pnand %p2475_p0, %p2469_p1 }
  0x53   : > { %2479 = shalt.err (!%p2476_p2)
}
  0x54   : > { %s2633_s3 = smov 64   ;;  %s2634_s1 = smov 4  }
  0x55   : > { %s3198_s7 = sld [smem:[#allocation28_spill]]  ;;  %s2635_s23 = smov [#allocation15]  }
  0x56   : > { %s539_s16 = sshll.u32 %s2635_s23, 4  ;;  %s540_s16 = int_to_ptr.vmem [resolvable:$true] %s539_s16 }
  0x57   : > { %s2491_s14 = scalar_lea.vmem %s540_s16, 256  ;;  %p2499_p10 = scmp.lt.s32.totalorder %s540_s16, %s540_s16 }
  0x58   : > { %p2492_p5 = scmp.ne.s32.totalorder %s540_s16, %s2491_s14  ;;  %p2500_p11 = scmp.lt.s32.totalorder %s2491_s14, %s2491_s14 }
  0x5a   : > { %p2494_p8 = pnand %p2492_p5, %p2790_p7  ;;  %p2501_p12 = por %p2500_p11, %p2499_p10 }
  0x5b   : > { %2225 = dma.hbm_to_vmem [thread:$0]  (!%p2782_p6), %s3198_s7, 256, %s504_s20, [#allocation11], %s2633_s3, %s2633_s3, %s2634_s1  }
  0x5c   : > { %p2495_p9 = pneg %p2494_p8 }
  0x5e   : > { %p2502_p3 = pnand %p2501_p12, %p2495_p9 }
  0x60   : > { %2505 = shalt.err (!%p2502_p3)
}
  0x61   : > { %s3199_s13 = sld [smem:[#allocation30_spill]]  ;;  %s1970_s19 = sadd.s32 4294967294, %s2626_s29  }
  0x62   : > { %s48_s20 = sadd.s32 1, %s2622_s28  ;;  %s109_s22 = sadd.s32 1, %s2614_s26 }
  0x63   : > { %p50_p7 = scmp.ge.s32.totalorder %s48_s20, 2  ;;  %p116_p1 = scmp.ne.s32.totalorder %s2614_s26, %s2610_s25 }
  0x64   : > { %p117_p4 = scmp.eq.s32.totalorder %s2626_s29, 0  ;;  %p122_p0 = scmp.ne.s32.totalorder %s2610_s25, %s2606_s24 }
  0x65   : > { %s3224_s20 = smov (%p50_p7, %s48_s20), 0  ;;  %p3203_p5 = scmp.ne.s32.totalorder %s3190_s30, 0 }
  0x66   : > { %3200 = sst [smem:[#allocation22_spill]] %s3224_s20  ;;  %p2850_p13 = por %p117_p4, %p116_p1 }
  0x67   : > { %2231 = dma.hbm_to_vmem [thread:$0]  (!%p2782_p6), %s3199_s13, 256, %s540_s16, [#allocation14], %s2633_s3, %s2633_s3, %s2634_s1  }
  0x68   : > { %s106_s3 = ssub.s32 %s2622_s28, %s3224_s20  ;;  %s3202_s1 = sadd.s32 4294967295, %s2626_s29  }
  0x69   : > { %p442_p6 = scmp.eq.s32.totalorder %s3202_s1, 1  ;;  %p107_p2 = scmp.eq.s32.totalorder %s106_s3, 0 }
  0x6a   : > { %p2862_p8 = por %p3203_p5, %p122_p0  ;;  %p448_p10 = scmp.eq.s32.totalorder %s1970_s19, 1 }
  0x6b   : > { %p2866_p9 = por %p442_p6, %p116_p1  ;;  %p2246_p12 = scmp.lt.s32.totalorder %s2626_s29, 2 }
  0x6c   : > { %s2871_s16 = scalar_select %p107_p2, %s2614_s26, %s109_s22  }
  0x6d   : > { %p2873_p11 = por %p448_p10, %p122_p0  ;;  %s579_s0 = sand.u32 1, %s2614_s26  }
  0x6e   : > { %s1979_s15 = sshll.u32 %s2622_s28, 4  ;;  %s582_s6 = scalar_lea.vmem [#allocation4], %s579_s0 }
  0x6f   : > { %s587_s4 = scalar_lea.hbm %s3155_s2, %s1979_s15  ;;  %s589_s7 = sshll.u32 %s582_s6, 4  ;;  %s590_s7 = int_to_ptr.vmem [resolvable:$true] %s589_s7 }
  0x70   : > { %p2885_p3 = pnand %p2246_p12, %p2850_p13  ;;  %s580_s19 = scalar_lea.sflag [#allocation5], %s579_s0 }
  0x71   : > { %s2519_s22 = scalar_lea.vmem %s590_s7, 16  ;;  %s2636_s13 = smov [#allocation4]  }
  0x72   : > { %p2508_p7 = pneg %p2885_p3  ;;  %p2520_p1 = scmp.ne.s32.totalorder %s590_s7, %s2519_s22 }
  0x73   : > { %s2524_s20 = sshll.u32 %s2636_s13, 4  ;;  %s2525_s20 = int_to_ptr.vmem [resolvable:$false] %s2524_s20 }
  0x74   : > { %p2522_p4 = pnand %p2520_p1, %p2508_p7  ;;  %s2526_s15 = scalar_lea.vmem %s2525_s20, 32 }
  0x75   : > { %p2527_p6 = scmp.lt.s32.totalorder %s590_s7, %s2525_s20  ;;  %p2528_p2 = scmp.lt.s32.totalorder %s2526_s15, %s2519_s22 }
  0x76   : > { %p2523_p0 = pneg %p2522_p4 }
  0x77   : > { %p2529_p5 = por %p2528_p2, %p2527_p6 }
  0x79   : > { %p2530_p10 = pnand %p2529_p5, %p2523_p0 }
  0x7b   : > { %2533 = shalt.err (!%p2530_p10)
}
  0x7c   : > { %2235 = dma.hbm_to_vmem [thread:$0]  (!%p2885_p3), %s587_s4, 16, %s590_s7, %s580_s19  }
  0x7d   : > { %p3208_p13 = scmp.ne.s32.totalorder %s3191_s18, 0 }
  0x7e   : > { %s2896_s6 = sand.u32 (!%p3208_p13), 1, %s2610_s25  }
  0x7f   : > { %598 = sbr.rel (%p3208_p13) target bundleno = 2485 (0x9b5), region = 88  ;;  %s601_s13 = scalar_lea.sflag (!%p3208_p13), [#allocation5], %s2896_s6 }
  0x80   : > { %s603_s21 = scalar_lea.vmem (!%p3208_p13), [#allocation4], %s2896_s6 }
  0x84   : > { %2585 = dma.done.wait (%p2862_p8), %s601_s13, 16  }
  0x85   : > { %2587 = vsyncadd (%p2862_p8), %s601_s13, 4294967280  ;;  %p3209_p12 = scmp.ne.s32.totalorder %s3190_s30, 0 }
  0x87   : > { %2589 = dma.done.wait (%p3209_p12), [#allocation8], 32  }
  0x88   : > { %2591 = vsyncadd (%p3209_p12), [#allocation8], 4294967264 }
  0x89   : > { %2593 = dma.done.wait (%p3209_p12), [#allocation11], 272  }
  0x8a   : > { %2595 = vsyncadd (%p3209_p12), [#allocation11], 4294967024 }
  0x8b   : > { %2597 = dma.done.wait (%p3209_p12), [#allocation14], 272  }
  0x8c   : > { %2599 = vsyncadd (%p3209_p12), [#allocation14], 4294967024  ;;  %p688_p8 = scmp.lt.s32.totalorder %s2618_s27, 1  ;;  %s3210_s20 = sld [smem:[#allocation23_spill]]  ;;  %vm707_vm0 = vcmask 261120   ;;  %v2316_v14 = vld [vmem:[#allocation12 + $0x8] sm:$0xff]  }
  0x8d   : > { %s3211_s1 = sld [smem:[#allocation24_spill]]  ;;  %v2318_v15 = vld [vmem:[%s3158_s5 + $0x8] sm:$0xff]   ;;  %v2637_v16 = vmov 0.0   ;;  %vm2638_vm1 = vmmov 0   ;;  %v2319_v18 = vld [vmem:[%s3158_s5] sm:$0xff]   ;;  %vm817_vm2 = vcmask 60416  }
  0x8e   : > { %s689_s4 = scalar_select %p688_p8, %s2618_s27, 1  ;;  %2077 = vmatprep.subr.bf16.mxu0 %v2637_v16  ;;  %2085 = vmatprep.subr.bf16.mxu1 %v2637_v16  ;;  %v2317_v17 = vld [vmem:[#allocation12] sm:$0xff]   ;;  %v1990_v26 = vld [vmem:[#allocation7] ss:$0 sm:$0xff]  ;;  %v1991_v28 = vld [vmem:[#allocation9] ss:$0 sm:$0xff] }
  0x8f   : > { %2078 = vmatpush3.bf16.msra.mxu0 %v2316_v14  ;;  %2086 = vmatpush3.bf16.msra.mxu1 %v2318_v15  ;;  %v1992_v37 = vld [vmem:[#allocation13] ss:$0 sm:$0xff]  ;;  %v2002_v41 = vld [vmem:[#allocation10] ss:$0 sm:$0xff]  ;;  %s2641_s8 = smov 104   ;;  %vm981_vm3 = vcmask 64512  }
  0x90   : > { %s1988_s7 = sshll.u32 %s689_s4, 3  ;;  %2079 = vmatprep.subr.bf16.mxu0 %v2637_v16  ;;  %2081 = vmatprep.mubr.msk.bf16.mxu0 %vm2638_vm1, %v2637_v16  ;;  %s2639_s4 = smov 120   ;;  %vm1217_vm4 = vcmask 1043456   ;;  %vm1748_vm5 = vcmask 523264  }
  0x91   : > { %2087 = vmatprep.subr.bf16.mxu1 %v2637_v16  ;;  %2089 = vmatprep.mubr.msk.bf16.mxu1 %vm2638_vm1, %v2637_v16  ;;  %s3213_s13 = sld [smem:[#allocation31_spill]]  ;;  %s2032_s18 = sshll.u32 %s2618_s27, 7 }
  0x92   : > { %s691_s17 = scalar_lea.vmem %s3210_s20, %s1988_s7  ;;  %s3212_s20 = sld [smem:[#allocation32_spill]] }
  0x93   : > { %s698_s19 = scalar_lea.vmem %s3211_s1, %s1988_s7  ;;  %v704_v0 = vld [vmem:[%s691_s17] sm:$0xff]  ;;  %2080 = vmatpush3.bf16.msra.mxu0 %v2317_v17  ;;  %2088 = vmatpush3.bf16.msra.mxu1 %v2319_v18  ;;  %s2640_s7 = smov 112  }
  0x94   : > { %v2924_v1 = vld [vmem:[%s698_s19] sm:$0xff]  ;;  %v708_v2 = vsel %vm707_vm0, %v704_v0, 0.0  ;;  %2093 = vmatprep.subr.bf16.mxu0 %v2637_v16  ;;  %2099 = vmatprep.subr.bf16.mxu1 %v2637_v16  ;;  %s3215_s19 = sld [smem:[#allocation34_spill]]  ;;  %s1795_s27 = scalar_lea.sflag [#allocation6], %s2896_s6 }
  0x95   : > { %v854_v3 = vsel %vm707_vm0, %v2924_v1, 0.0  ;;  %709 = vadd.xlane.f32.xlu0 %v708_v2  ;;  %s2643_s15 = smov [#allocation16]  }
  0x99   : > { %855 = vadd.xlane.f32.xlu0 %v854_v3 }
  0x9a   : > { %s3104_s30 = scalar_lea.hbm %s3215_s19, %s2032_s18 }
 0x11e   : > { %v710_v4 = vpop.xlane.xlu0 %709 }
 0x11f   : > { %v712_v5 = vmul.f32 0.03125, %v710_v4 }
 0x121   : > { %v713_v6 = vsub.f32 %v704_v0, %v712_v5 }
 0x122   : > { %v856_v7 = vpop.xlane.xlu0 %855 }
 0x123   : > { %v858_v8 = vmul.f32 0.03125, %v856_v7  ;;  %v714_v9 = vmul.f32 %v713_v6, %v713_v6 }
 0x125   : > { %v859_v10 = vsub.f32 %v2924_v1, %v858_v8  ;;  %v715_v11 = vsel %vm707_vm0, %v714_v9, 0.0  ;;  %v976_v9 = vlaneseq }
 0x126   : > { %716 = vadd.xlane.f32.xlu1 %v715_v11 }
 0x127   : > { %v860_v12 = vmul.f32 %v859_v10, %v859_v10 }
 0x129   : > { %v861_v13 = vsel %vm707_vm0, %v860_v12, 0.0  ;;  %v977_v12 = vshrl.u32 %v976_v9, 7 }
 0x12a   : > { %862 = vadd.xlane.f32.xlu1 %v861_v13 }
 0x12b   : > { %v978_v14 = vsub.s32 0, %v977_v12 }
 0x1af   : > { %v717_v19 = vpop.xlane.xlu1 %716 }
 0x1b0   : > { %v718_v20 = vmul.f32 0.03125, %v717_v19 }
 0x1b2   : > { %v719_v21 = vadd.f32 1e-06, %v718_v20 }
 0x1b3   : > { %v863_v22 = vpop.xlane.xlu1 %862 }
 0x1b4   : > { %2326 = vrsqrt.f32 %v719_v21  ;;  %v864_v23 = vmul.f32 0.03125, %v863_v22 }
 0x1b6   : > { %v865_v24 = vadd.f32 1e-06, %v864_v23 }
 0x1b8   : > { %2328 = vrsqrt.f32 %v865_v24 }
 0x1c1   : > { %v2327_v25 = vpop.eup %2326 }
 0x1c2   : > { %v721_v27 = vmul.f32 %v2327_v25, %v713_v6 }
 0x1c4   : > { %v728_v29 = vmul.f32 %v1990_v26, %v721_v27 }
 0x1c5   : > { %v2329_v30 = vpop.eup %2328 }
 0x1c6   : > { %v735_v31 = vadd.f32 %v1991_v28, %v728_v29  ;;  %v867_v32 = vmul.f32 %v2329_v30, %v859_v10  ;;  %v972_v10 = vld [vmem:[%s603_s21] sm:$0x1]  ;;  %s2642_s21 = smov 96  }
 0x1c7   : > { %v973_v11 = vsub.f32 1.0, %v972_v10 }
 0x1c8   : > { %v736_v33 = vpack.c.bf16 %v735_v31, %v735_v31  ;;  %v874_v34 = vmul.f32 %v1990_v26, %v867_v32 }
 0x1c9   : > { %v974_v13 = vmul.f32 -10000.0, %v973_v11 }
 0x1ca   : > { %2082 = vmatmul.mubr.msk.bf16.vlgmr.msra.gmra.mxu0 %vm707_vm0, %v736_v33  ;;  %v881_v35 = vadd.f32 %v1991_v28, %v874_v34 }
 0x1cb   : > { %2095 = vmatprep.mubr.msk.bf16.mxu0 %vm2638_vm1, %v2637_v16  ;;  %v979_v15 = vrot.slane %v974_v13, %v978_v14 }
 0x1cc   : > { %v882_v36 = vpack.c.bf16 %v881_v35, %v881_v35 }
 0x1ce   : > { %2090 = vmatmul.mubr.msk.bf16.vlgmr.msra.gmra.mxu1 %vm707_vm0, %v882_v36 }
 0x1cf   : > { %2101 = vmatprep.mubr.msk.bf16.mxu1 %vm2638_vm1, %v2637_v16 }
 0x28a   : > { %v797_v38 = vpop.f32.mrf.mxu0 }
 0x28b   : > { %v798_v39 = vadd.f32 %v1992_v37, %v797_v38 }
 0x28c   : > { %v2083_v40 = vpop.f32.mrf.mxu0 }
 0x28d   : > { %v2954_v42 = vpack.c.bf16 %v798_v39, %v798_v39  ;;  %804 = vrot.lane.b32.xlu0 %v798_v39, %s2639_s4  ;;  %807 = vrot.lane.b32.xlu1 %v798_v39, %s2640_s7 }
 0x28e   : > { %v800_v43 = vpop.f32.mrf.mxu0  ;;  %v943_v44 = vpop.f32.mrf.mxu1 }
 0x28f   : > { %818 = vst.msk [vmem:[#allocation2] sm:$0xf] %vm817_vm2, %v2954_v42  ;;  %v944_v45 = vadd.f32 %v2002_v41, %v943_v44 }
 0x290   : > { %v2084_v46 = vpop.f32.mrf.mxu0  ;;  %v2091_v47 = vpop.f32.mrf.mxu1 }
 0x291   : > { %v949_v48 = vmul.f32 0.35355338, %v944_v45  ;;  %810 = vrot.lane.b32.xlu1 %v798_v39, %s2641_s8 }
 0x292   : > { %v946_v49 = vpop.f32.mrf.mxu1 }
 0x293   : > { %954 = vrot.lane.b32.xlu0 %v949_v48, %s2640_s7  ;;  %v960_v53 = vpack.c.bf16 %v949_v48, %v949_v48 }
 0x294   : > { %v2092_v50 = vpop.f32.mrf.mxu1 }
 0x295   : > { %951 = vrot.lane.b32.xlu1 %v949_v48, %s2639_s4  ;;  %s1987_s4 = sshll.u32 %s2896_s6, 3 }
 0x296   : > { %v964_v51 = vld [vmem:[#allocation2] sm:$0xf]  ;;  %s687_s17 = scalar_lea.vmem [#allocation16], %s1987_s4 }
 0x297   : > { %v986_v52 = vsel %vm981_vm3, %v964_v51, 0  ;;  %s1809_s0 = sshll.u32 %s687_s17, 4  ;;  %s3106_s0 = int_to_ptr.vmem [resolvable:$true] %s1809_s0 }
 0x298   : > { %2094 = vmatpush3.bf16.xpose.msra.mxu0 %v986_v52  ;;  %s2534_s22 = scalar_lea.vmem %s3106_s0, 128 }
 0x299   : > { %957 = vrot.lane.b32.xlu1 %v949_v48, %s2641_s8  ;;  %2105 = vmatprep.subr.bf16.mxu0 %v2637_v16  ;;  %p2535_p3 = scmp.ne.s32.totalorder %s3106_s0, %s2534_s22 }
 0x29b   : > { %p2536_p7 = pnand %p2535_p3, %p2866_p9 }
 0x29d   : > { %p2537_p1 = pneg %p2536_p7 }
 0x29f   : > { %2096 = vmatmul.mubr.msk.bf16.vlgmr.msra.gmra.mxu0 %vm981_vm3, %v960_v53 }
 0x2a0   : > { %2107 = vmatprep.mubr.msk.bf16.mxu0 %vm2638_vm1, %v2637_v16 }
 0x2ff   : > { %v808_v54 = vpop.permute.xlu1 %807  ;;  %v805_v55 = vpop.permute.xlu0 %804 }
 0x300   : > { %v2963_v56 = vpack.c.bf16 %v808_v54, %v808_v54  ;;  %v2965_v57 = vpack.c.bf16 %v805_v55, %v805_v55 }
 0x302   : > { %820 = vst.msk [vmem:[#allocation2 + $0x8] sm:$0xf] %vm817_vm2, %v2963_v56  ;;  %819 = vst.msk [vmem:[#allocation2 + $0x4] sm:$0xf] %vm817_vm2, %v2965_v57 }
 0x303   : > { %v811_v58 = vpop.permute.xlu1 %810 }
 0x304   : > { %v2971_v59 = vpack.c.bf16 %v811_v58, %v811_v58 }
 0x305   : > { %v955_v0 = vpop.permute.xlu0 %954 }
 0x306   : > { %821 = vst.msk [vmem:[#allocation2 + $0xc] sm:$0xf] %vm817_vm2, %v2971_v59  ;;  %v962_v4 = vpack.c.bf16 %v955_v0, %v955_v0 }
 0x307   : > { %v952_v2 = vpop.permute.xlu1 %951 }
 0x308   : > { %v961_v5 = vpack.c.bf16 %v952_v2, %v952_v2 }
 0x309   : > { %v966_v60 = vld [vmem:[#allocation2 + $0x8] sm:$0xf]  ;;  %v965_v61 = vld [vmem:[#allocation2 + $0x4] sm:$0xf] }
 0x30a   : > { %v1078_v62 = vsel %vm981_vm3, %v966_v60, 0  ;;  %v1032_v63 = vsel %vm981_vm3, %v965_v61, 0 }
 0x30b   : > { %2106 = vmatpush3.bf16.xpose.msra.mxu0 %v1078_v62  ;;  %2100 = vmatpush3.bf16.xpose.msra.mxu1 %v1032_v63  ;;  %v958_v7 = vpop.permute.xlu1 %957 }
 0x30c   : > { %2111 = vmatprep.subr.bf16.mxu1 %v2637_v16  ;;  %2117 = vmatprep.subr.bf16.mxu0 %v2637_v16  ;;  %v963_v8 = vpack.c.bf16 %v958_v7, %v958_v7 }
 0x30d   : > { %v967_v3 = vld [vmem:[#allocation2 + $0xc] sm:$0xf] }
 0x30e   : > { %v1124_v6 = vsel %vm981_vm3, %v967_v3, 0 }
 0x312   : > { %2102 = vmatmul.mubr.msk.bf16.vlgmr.msra.gmra.mxu1 %vm981_vm3, %v961_v5  ;;  %2108 = vmatmul.mubr.msk.bf16.vlgmr.msra.gmra.mxu0 %vm981_vm3, %v962_v4 }
 0x313   : > { %2112 = vmatpush3.bf16.xpose.msra.mxu1 %v1124_v6  ;;  %2113 = vmatprep.mubr.msk.bf16.mxu1 %vm2638_vm1, %v2637_v16 }
 0x314   : > { %2123 = vmatprep.subr.bf16.mxu1 %v2637_v16  ;;  %2119 = vmatprep.mubr.msk.bf16.mxu0 %vm2638_vm1, %v2637_v16 }
 0x31a   : > { %2114 = vmatmul.mubr.msk.bf16.vlgmr.msra.gmra.mxu1 %vm981_vm3, %v963_v8 }
 0x31b   : > { %2125 = vmatprep.mubr.msk.bf16.mxu1 %vm2638_vm1, %v2637_v16 }
 0x35f   : > { %v1022_v17 = vpop.f32.mrf.mxu0 }
 0x360   : > { %v1023_v18 = vadd.f32 %v1022_v17, %v979_v15 }
 0x361   : > { %v2097_v19 = vpop.f32.mrf.mxu0 }
 0x362   : > { %v1166_v20 = vsel %vm981_vm3, %v1023_v18, -inf }
 0x363   : > { %1167 = vmax.xlane.f32.xlu0 %v1166_v20  ;;  %v1025_v21 = vpop.f32.mrf.mxu0 }
 0x365   : > { %v2098_v22 = vpop.f32.mrf.mxu0 }
 0x3d2   : > { %v1068_v23 = vpop.f32.mrf.mxu1  ;;  %v1114_v24 = vpop.f32.mrf.mxu0 }
 0x3d3   : > { %v1069_v25 = vadd.f32 %v1068_v23, %v979_v15  ;;  %v1115_v26 = vadd.f32 %v1114_v24, %v979_v15 }
 0x3d4   : > { %v2103_v27 = vpop.f32.mrf.mxu1  ;;  %v2109_v28 = vpop.f32.mrf.mxu0 }
 0x3d5   : > { %v1169_v29 = vsel %vm981_vm3, %v1069_v25, -inf  ;;  %v1172_v30 = vsel %vm981_vm3, %v1115_v26, -inf  ;;  %v1403_v27 = vld [vmem:[%s3162_s9] sm:$0xf] }
 0x3d6   : > { %1170 = vmax.xlane.f32.xlu1 %v1169_v29  ;;  %v1071_v31 = vpop.f32.mrf.mxu1  ;;  %1173 = vmax.xlane.f32.xlu0 %v1172_v30  ;;  %v1117_v32 = vpop.f32.mrf.mxu0  ;;  %v1411_v28 = vsel %vm1217_vm4, %v1403_v27, 0  ;;  %v1404_v29 = vld [vmem:[%s3162_s9 + $0x4] sm:$0xf] }
 0x3d7   : > { %v1457_v30 = vsel %vm1217_vm4, %v1404_v29, 0  ;;  %v1405_v31 = vld [vmem:[%s3162_s9 + $0x8] sm:$0xf]  ;;  %v1406_v32 = vld [vmem:[%s3162_s9 + $0xc] sm:$0xf] }
 0x3d8   : > { %v2104_v33 = vpop.f32.mrf.mxu1  ;;  %v2110_v34 = vpop.f32.mrf.mxu0 }
 0x3da   : > { %v1160_v35 = vpop.f32.mrf.mxu1 }
 0x3db   : > { %v1161_v36 = vadd.f32 %v1160_v35, %v979_v15 }
 0x3dc   : > { %v2115_v37 = vpop.f32.mrf.mxu1 }
 0x3dd   : > { %v1175_v38 = vsel %vm981_vm3, %v1161_v36, -inf }
 0x3de   : > { %v1163_v39 = vpop.f32.mrf.mxu1  ;;  %1176 = vmax.xlane.f32.xlu0 %v1175_v38 }
 0x3df   : > { %v1549_v39 = vsel %vm1217_vm4, %v1406_v32, 0  ;;  %v2020_v32 = vld [vmem:[%s3165_s12] ss:$0 sm:$0xff] }
 0x3e0   : > { %v2116_v40 = vpop.f32.mrf.mxu1 }
 0x3ec   : > { %v1168_v41 = vpop.xlane.xlu0 %1167 }
 0x3ed   : > { %v1178_v43 = vsub.f32 %v1023_v18, %v1168_v41 }
 0x3ef   : > { %v1182_v44 = vmul.f32 1.442695, %v1178_v43 }
 0x3f1   : > { %2330 = vpow2.f32 %v1182_v44 }
 0x3fe   : > { %v2331_v45 = vpop.eup %2330 }
 0x3ff   : > { %v1190_v46 = vsel %vm981_vm3, %v2331_v45, 0.0 }
 0x400   : > { %1191 = vadd.xlane.f32.xlu0 %v1190_v46 }
 0x45f   : > { %v1171_v47 = vpop.xlane.xlu1 %1170  ;;  %v1174_v48 = vpop.xlane.xlu0 %1173 }
 0x460   : > { %v1179_v49 = vsub.f32 %v1069_v25, %v1171_v47  ;;  %v1180_v50 = vsub.f32 %v1115_v26, %v1174_v48 }
 0x462   : > { %v1184_v51 = vmul.f32 1.442695, %v1179_v49  ;;  %v1186_v52 = vmul.f32 1.442695, %v1180_v50 }
 0x464   : > { %2332 = vpow2.f32 %v1184_v51 }
 0x465   : > { %2334 = vpow2.f32 %v1186_v52 }
 0x467   : > { %v1177_v60 = vpop.xlane.xlu0 %1176 }
 0x468   : > { %v1181_v61 = vsub.f32 %v1161_v36, %v1177_v60  ;;  %v1503_v36 = vsel %vm1217_vm4, %v1405_v31, 0 }
 0x46a   : > { %v1188_v62 = vmul.f32 1.442695, %v1181_v61 }
 0x46c   : > { %2336 = vpow2.f32 %v1188_v62 }
 0x471   : > { %v2333_v53 = vpop.eup %2332 }
 0x472   : > { %v2335_v54 = vpop.eup %2334  ;;  %v1193_v55 = vsel %vm981_vm3, %v2333_v53, 0.0 }
 0x473   : > { %1194 = vadd.xlane.f32.xlu1 %v1193_v55  ;;  %v1196_v58 = vsel %vm981_vm3, %v2335_v54, 0.0 }
 0x474   : > { %1197 = vadd.xlane.f32.xlu0 %v1196_v58 }
 0x479   : > { %v2337_v63 = vpop.eup %2336 }
 0x47a   : > { %v1199_v0 = vsel %vm981_vm3, %v2337_v63, 0.0 }
 0x484   : > { %836 = vrot.lane.b32.xlu1 %v2965_v57, %s2642_s21 }
 0x488   : > { %838 = vrot.lane.b32.xlu1 %v2963_v56, %s2642_s21 }
 0x489   : > { %v1192_v2 = vpop.xlane.xlu0 %1191 }
 0x48a   : > { %834 = vrot.lane.b32.xlu0 %v2954_v42, %s2642_s21  ;;  %2338 = vrcp.f32 %v1192_v2 }
 0x497   : > { %v2339_v5 = vpop.eup %2338 }
 0x498   : > { %v1206_v7 = vmul.f32 %v2339_v5, %v2331_v45 }
 0x49a   : > { %v1210_v12 = vpack.c.bf16 %v1206_v7, %v1206_v7 }
 0x4ac   : > { %1200 = vadd.xlane.f32.xlu1 %v1199_v0 }
 0x4bd   : > { %840 = vrot.lane.b32.xlu1 %v2971_v59, %s2642_s21  ;;  %s3214_s21 = sld [smem:[#allocation33_spill]] }
 0x4fc   : > { %v1195_v3 = vpop.xlane.xlu1 %1194 }
 0x4fd   : > { %2340 = vrcp.f32 %v1195_v3  ;;  %v1198_v4 = vpop.xlane.xlu0 %1197 }
 0x4fe   : > { %2342 = vrcp.f32 %v1198_v4 }
 0x500   : > { %v837_v57 = vpop.permute.xlu1 %836 }
 0x501   : > { %847 = vst.msk [vmem:[#allocation3 + $0x4] sm:$0xf] %vm817_vm2, %v837_v57  ;;  %v835_v42 = vpop.permute.xlu0 %834 }
 0x502   : > { %846 = vst.msk [vmem:[#allocation3] sm:$0xf] %vm817_vm2, %v835_v42 }
 0x504   : > { %v839_v56 = vpop.permute.xlu1 %838 }
 0x505   : > { %848 = vst.msk [vmem:[#allocation3 + $0x8] sm:$0xf] %vm817_vm2, %v839_v56 }
 0x508   : > { %v969_v6 = vld [vmem:[#allocation3 + $0x4] sm:$0xf] }
 0x509   : > { %v968_v59 = vld [vmem:[#allocation3] sm:$0xf]  ;;  %v1265_v8 = vsel %vm1217_vm4, %v969_v6, 0 }
 0x50a   : > { %v2341_v9 = vpop.eup %2340  ;;  %v1219_v10 = vsel %vm1217_vm4, %v968_v59, 0  ;;  %2124 = vmatpush3.bf16.msra.mxu1 %v1265_v8 }
 0x50b   : > { %2118 = vmatpush3.bf16.msra.mxu0 %v1219_v10  ;;  %v1207_v11 = vmul.f32 %v2341_v9, %v2333_v53  ;;  %2135 = vmatprep.subr.bf16.mxu1 %v2637_v16  ;;  %v2343_v14 = vpop.eup %2342 }
 0x50c   : > { %2129 = vmatprep.subr.bf16.mxu0 %v2637_v16  ;;  %v970_v13 = vld [vmem:[#allocation3 + $0x8] sm:$0xf]  ;;  %v1208_v18 = vmul.f32 %v2343_v14, %v2335_v54 }
 0x50d   : > { %v1311_v15 = vsel %vm1217_vm4, %v970_v13, 0  ;;  %v1211_v17 = vpack.c.bf16 %v1207_v11, %v1207_v11  ;;  %v2018_v11 = vld [vmem:[%s3163_s10] ss:$0 sm:$0xff] }
 0x50e   : > { %2120 = vmatmul.mubr.msk.bf16.vlgmr.msra.gmra.mxu0 %vm981_vm3, %v1210_v12  ;;  %v1212_v19 = vpack.c.bf16 %v1208_v18, %v1208_v18 }
 0x50f   : > { %2130 = vmatpush3.bf16.msra.mxu0 %v1311_v15  ;;  %2126 = vmatmul.mubr.msk.bf16.vlgmr.msra.gmra.mxu1 %vm981_vm3, %v1211_v17 }
 0x510   : > { %2131 = vmatprep.mubr.msk.bf16.mxu0 %vm2638_vm1, %v2637_v16  ;;  %2137 = vmatprep.mubr.msk.bf16.mxu1 %vm2638_vm1, %v2637_v16 }
 0x511   : > { %2141 = vmatprep.subr.bf16.mxu0 %v2637_v16 }
 0x516   : > { %2132 = vmatmul.mubr.msk.bf16.vlgmr.msra.gmra.mxu0 %vm981_vm3, %v1212_v19 }
 0x517   : > { %2143 = vmatprep.mubr.msk.bf16.mxu0 %vm2638_vm1, %v2637_v16  ;;  %2142 = vmatpush3.bf16.msra.mxu0 %v1411_v28 }
 0x518   : > { %2153 = vmatprep.subr.bf16.mxu0 %v2637_v16 }
 0x535   : > { %v1201_v20 = vpop.xlane.xlu1 %1200 }
 0x536   : > { %2344 = vrcp.f32 %v1201_v20 }
 0x539   : > { %v841_v21 = vpop.permute.xlu1 %840 }
 0x53a   : > { %849 = vst.msk [vmem:[#allocation3 + $0xc] sm:$0xf] %vm817_vm2, %v841_v21 }
 0x541   : > { %v971_v22 = vld [vmem:[#allocation3 + $0xc] sm:$0xf] }
 0x542   : > { %v1357_v23 = vsel %vm1217_vm4, %v971_v22, 0 }
 0x543   : > { %v2345_v24 = vpop.eup %2344  ;;  %2136 = vmatpush3.bf16.msra.mxu1 %v1357_v23 }
 0x544   : > { %v1209_v25 = vmul.f32 %v2345_v24, %v2337_v63  ;;  %2147 = vmatprep.subr.bf16.mxu1 %v2637_v16 }
 0x546   : > { %v1213_v26 = vpack.c.bf16 %v1209_v25, %v1209_v25  ;;  %v2320_v25 = vld [vmem:[#allocation15 + $0x8] sm:$0xff]  }
 0x548   : > { %2138 = vmatmul.mubr.msk.bf16.vlgmr.msra.gmra.mxu1 %vm981_vm3, %v1213_v26  ;;  %v2321_v26 = vld [vmem:[#allocation15] sm:$0xff]  }
 0x549   : > { %2149 = vmatprep.mubr.msk.bf16.mxu1 %vm2638_vm1, %v2637_v16  ;;  %2148 = vmatpush3.bf16.msra.mxu1 %v1457_v30  ;;  %v2019_v30 = vld [vmem:[%s3164_s11] ss:$0 sm:$0xff] }
 0x54a   : > { %2159 = vmatprep.subr.bf16.mxu1 %v2637_v16 }
 0x5ce   : > { %v1255_v33 = vpop.f32.mrf.mxu0 }
 0x5cf   : > { %v1399_v34 = vpack.c.bf16 %v1255_v33, %v1255_v33  ;;  %v1301_v35 = vpop.f32.mrf.mxu1 }
 0x5d0   : > { %v2121_v37 = vpop.f32.mrf.mxu0  ;;  %v1400_v38 = vpack.c.bf16 %v1301_v35, %v1301_v35 }
 0x5d1   : > { %2144 = vmatmul.mubr.msk.bf16.vlgmr.msra.gmra.mxu0 %vm981_vm3, %v1399_v34  ;;  %v2127_v40 = vpop.f32.mrf.mxu1  ;;  %v2323_v37 = vld [vmem:[%s3212_s20 + $0x10] sm:$0xff]  }
 0x5d2   : > { %v1258_v41 = vpop.f32.mrf.mxu0  ;;  %2150 = vmatmul.mubr.msk.bf16.vlgmr.msra.gmra.mxu1 %vm981_vm3, %v1400_v38  ;;  %2154 = vmatpush3.bf16.msra.mxu0 %v1503_v36  ;;  %v2322_v36 = vld [vmem:[%s3212_s20 + $0x18] sm:$0xff]   ;;  %v2324_v38 = vld [vmem:[%s3212_s20 + $0x8] sm:$0xff]   ;;  %v2021_v40 = vld [vmem:[%s3213_s13] ss:$0 sm:$0xff]  ;;  %s2538_s13 = sshll.u32 %s2643_s15, 4  ;;  %s2539_s13 = int_to_ptr.vmem [resolvable:$false] %s2538_s13 }
 0x5d3   : > { %v1304_v43 = vpop.f32.mrf.mxu1  ;;  %2155 = vmatprep.mubr.msk.bf16.mxu0 %vm2638_vm1, %v2637_v16  ;;  %2160 = vmatpush3.bf16.msra.mxu1 %v1549_v39  ;;  %v2325_v39 = vld [vmem:[%s3212_s20] sm:$0xff]   ;;  %s2540_s4 = scalar_lea.vmem %s2539_s13, 256  ;;  %p2541_p4 = scmp.lt.s32.totalorder %s3106_s0, %s2539_s13 }
 0x5d4   : > { %v2122_v44 = vpop.f32.mrf.mxu0  ;;  %2161 = vmatprep.mubr.msk.bf16.mxu1 %vm2638_vm1, %v2637_v16  ;;  %2165 = vmatprep.subr.bf16.mxu0 %v2637_v16  ;;  %p2542_p0 = scmp.lt.s32.totalorder %s2540_s4, %s2534_s22 }
 0x5d5   : > { %v2128_v45 = vpop.f32.mrf.mxu1  ;;  %2173 = vmatprep.subr.bf16.mxu1 %v2637_v16 }
 0x5d6   : > { %v1347_v46 = vpop.f32.mrf.mxu0  ;;  %p2543_p6 = por %p2542_p0, %p2541_p4 }
 0x5d7   : > { %v1401_v47 = vpack.c.bf16 %v1347_v46, %v1347_v46 }
 0x5d8   : > { %v2133_v48 = vpop.f32.mrf.mxu0  ;;  %p2544_p2 = pnand %p2543_p6, %p2537_p1 }
 0x5d9   : > { %2156 = vmatmul.mubr.msk.bf16.vlgmr.msra.gmra.mxu0 %vm981_vm3, %v1401_v47 }
 0x5da   : > { %v1350_v49 = vpop.f32.mrf.mxu0  ;;  %2169 = vmatprep.mubr.msk.bf16.mxu0 %vm2638_vm1, %v2637_v16  ;;  %2166 = vmatpush3.bf16.msra.mxu0 %v2320_v25 }
 0x5db   : > { %2167 = vmatprep.subr.bf16.mxu0 %v2637_v16 }
 0x5dc   : > { %v2134_v50 = vpop.f32.mrf.mxu0 }
 0x5de   : > { %2168 = vmatpush3.bf16.msra.mxu0 %v2321_v26 }
 0x608   : > { %v1393_v51 = vpop.f32.mrf.mxu1 }
 0x609   : > { %v1402_v52 = vpack.c.bf16 %v1393_v51, %v1393_v51 }
 0x60a   : > { %v2139_v53 = vpop.f32.mrf.mxu1 }
 0x60b   : > { %2162 = vmatmul.mubr.msk.bf16.vlgmr.msra.gmra.mxu1 %vm981_vm3, %v1402_v52  ;;  %v2025_v52 = vld [vmem:[%s3214_s21] ss:$0 sm:$0xff] }
 0x60c   : > { %v1396_v54 = vpop.f32.mrf.mxu1  ;;  %2181 = vmatprep.mubr.msk.bf16.mxu1 %vm2638_vm1, %v2637_v16  ;;  %2174 = vmatpush3.bf16.msra.mxu1 %v2322_v36 }
 0x60d   : > { %2175 = vmatprep.subr.bf16.mxu1 %v2637_v16 }
 0x60e   : > { %v2140_v55 = vpop.f32.mrf.mxu1 }
 0x610   : > { %2176 = vmatpush3.bf16.msra.mxu1 %v2323_v37 }
 0x611   : > { %2177 = vmatprep.subr.bf16.mxu1 %v2637_v16 }
 0x614   : > { %2178 = vmatpush3.bf16.msra.mxu1 %v2324_v38 }
 0x615   : > { %2179 = vmatprep.subr.bf16.mxu1 %v2637_v16 }
 0x618   : > { %2180 = vmatpush3.bf16.msra.mxu1 %v2325_v39 }
 0x691   : > { %v1447_v58 = vpop.f32.mrf.mxu0 }
 0x692   : > { %v1493_v60 = vpop.f32.mrf.mxu1  ;;  %v1591_v6 = vsel %vm707_vm0, %v1447_v58, 0.0 }
 0x693   : > { %v2145_v61 = vpop.f32.mrf.mxu0  ;;  %v1592_v5 = vsel %vm707_vm0, %v1493_v60, 0.0 }
 0x694   : > { %v2151_v62 = vpop.f32.mrf.mxu1  ;;  %v1593_v59 = vadd.f32 %v1592_v5, %v1591_v6 }
 0x695   : > { %v1450_v63 = vpop.f32.mrf.mxu0 }
 0x696   : > { %v1496_v0 = vpop.f32.mrf.mxu1 }
 0x697   : > { %v2146_v2 = vpop.f32.mrf.mxu0 }
 0x698   : > { %v2152_v3 = vpop.f32.mrf.mxu1 }
 0x699   : > { %v1539_v4 = vpop.f32.mrf.mxu0 }
 0x69a   : > { %v1594_v7 = vsel %vm707_vm0, %v1539_v4, 0.0 }
 0x69b   : > { %v2157_v57 = vpop.f32.mrf.mxu0  ;;  %v1595_v8 = vadd.f32 %v1594_v7, %v1593_v59 }
 0x69d   : > { %v1542_v42 = vpop.f32.mrf.mxu0 }
 0x69f   : > { %v2158_v56 = vpop.f32.mrf.mxu0 }
 0x6cb   : > { %v1585_v9 = vpop.f32.mrf.mxu1 }
 0x6cc   : > { %v1596_v10 = vsel %vm707_vm0, %v1585_v9, 0.0 }
 0x6cd   : > { %v1597_v12 = vadd.f32 %v1596_v10, %v1595_v8  ;;  %v2163_v13 = vpop.f32.mrf.mxu1 }
 0x6cf   : > { %v1605_v14 = vadd.f32 %v2018_v11, %v1597_v12  ;;  %v1588_v15 = vpop.f32.mrf.mxu1 }
 0x6d1   : > { %v2164_v17 = vpop.f32.mrf.mxu1  ;;  %v1606_v18 = vadd.f32 %v1605_v14, %v2924_v1 }
 0x6d3   : > { %v1609_v19 = vsel %vm707_vm0, %v1606_v18, 0.0 }
 0x6d4   : > { %1610 = vadd.xlane.f32.xlu0 %v1609_v19 }
 0x75d   : > { %v1611_v20 = vpop.xlane.xlu0 %1610 }
 0x75e   : > { %v1612_v21 = vmul.f32 0.03125, %v1611_v20 }
 0x760   : > { %v1613_v22 = vsub.f32 %v1606_v18, %v1612_v21 }
 0x762   : > { %v1614_v23 = vmul.f32 %v1613_v22, %v1613_v22 }
 0x764   : > { %v1615_v24 = vsel %vm707_vm0, %v1614_v23, 0.0 }
 0x765   : > { %1616 = vadd.xlane.f32.xlu1 %v1615_v24 }
 0x7ee   : > { %v1617_v27 = vpop.xlane.xlu1 %1616 }
 0x7ef   : > { %v1618_v28 = vmul.f32 0.03125, %v1617_v27 }
 0x7f1   : > { %v1619_v29 = vadd.f32 1e-06, %v1618_v28 }
 0x7f3   : > { %2346 = vrsqrt.f32 %v1619_v29 }
 0x800   : > { %v2347_v1 = vpop.eup %2346 }
 0x801   : > { %v1621_v31 = vmul.f32 %v2347_v1, %v1613_v22 }
 0x803   : > { %v1628_v33 = vmul.f32 %v2019_v30, %v1621_v31 }
 0x805   : > { %v1635_v34 = vadd.f32 %v2020_v32, %v1628_v33 }
 0x807   : > { %v1636_v35 = vpack.c.bf16 %v1635_v34, %v1635_v34 }
 0x809   : > { %2170 = vmatmul.mubr.msk.bf16.vlgmr.msra.gmra.mxu0 %vm707_vm0, %v1636_v35 }
 0x8c9   : > { %v1697_v41 = vpop.f32.mrf.mxu0 }
 0x8ca   : > { %v1698_v43 = vadd.f32 %v2021_v40, %v1697_v41 }
 0x8cb   : > { %v2171_v44 = vpop.f32.mrf.mxu0 }
 0x8cc   : > { %v1704_v45 = vmul.f32 0.70710677, %v1698_v43  ;;  %v1703_v16 = vmul.f32 0.5, %v1698_v43 }
 0x8cd   : > { %v1700_v46 = vpop.f32.mrf.mxu0 }
 0x8ce   : > { %2348 = verf.f32 %v1704_v45 }
 0x8cf   : > { %v2172_v47 = vpop.f32.mrf.mxu0 }
 0x8db   : > { %v2349_v48 = vpop.eup %2348 }
 0x8dc   : > { %v1706_v49 = vadd.f32 1.0, %v2349_v48 }
 0x8de   : > { %v1707_v50 = vmul.f32 %v1706_v49, %v1703_v16 }
 0x8e0   : > { %v1708_v51 = vpack.c.bf16 %v1707_v50, %v1707_v50 }
 0x8e2   : > { %2182 = vmatmul.mubr.msk.bf16.vlgmr.msra.gmra.mxu1 %vm1748_vm5, %v1708_v51 }
 0x9a2   : > { %v1786_v53 = vpop.f32.mrf.mxu1 }
 0x9a3   : > { %v1787_v54 = vadd.f32 %v2025_v52, %v1786_v53 }
 0x9a4   : > { %v2183_v55 = vpop.f32.mrf.mxu1 }
 0x9a5   : > { %v1792_v58 = vadd.f32 %v1787_v54, %v1606_v18 }
 0x9a6   : > { %v1789_v60 = vpop.f32.mrf.mxu1 }
 0x9a7   : > { %1793 = vst.msk [vmem:[%s687_s17] sm:$0xff] %vm707_vm0, %v1792_v58 }
 0x9a8   : > { %v2184_v61 = vpop.f32.mrf.mxu1 }
 0x9a9   : > { %2547 = shalt.err (!%p2544_p2)
}
 0x9aa   : > { %s2548_s7 = scalar_lea.hbm %s3104_s30, 128  ;;  %s2552_s21 = scalar_lea.hbm %s3215_s19, 256 }
 0x9ab   : > { %p2549_p5 = scmp.ne.s32.totalorder %s3104_s30, %s2548_s7  ;;  %p2553_p12 = scmp.lt.s32.totalorder %s3104_s30, %s3215_s19 }
 0x9ac   : > { %p2554_p8 = scmp.lt.s32.totalorder %s2552_s21, %s2548_s7 }
 0x9ad   : > { %p2550_p10 = pnand %p2549_p5, %p2866_p9 }
 0x9ae   : > { %p2555_p3 = por %p2554_p8, %p2553_p12 }
 0x9af   : > { %p2551_p13 = pneg %p2550_p10 }
 0x9b1   : > { %p2556_p7 = pnand %p2555_p3, %p2551_p13 }
 0x9b3   : > { %2559 = shalt.err (!%p2556_p7)
}
 0x9b4   : > { %2211 = dma.vmem_to_hbm [thread:$0]  (%p2866_p9), %s3106_s0, 128, %s3104_s30, %s1795_s27  }
 0x9b5 PF: > { %s1821_s3 = sand.u32 1, %s2606_s24   ;;  %p3216_p1 = scmp.ge.s32.totalorder %s2626_s29, 2 }
 0x9b6   : > { %s1822_s1 = scalar_lea.sflag [#allocation6], %s1821_s3 }
 0x9b7   : > { %p2237_p4 = pnand %p3216_p1, %p2873_p11 }
 0x9b9   : > { %p2238_p0 = pneg %p2237_p4 }
 0x9bb   : > { %2601 = dma.done.wait (%p2238_p0), %s1822_s1, 128  }
 0x9bc   : > { %2603 = vsyncadd (%p2238_p0), %s1822_s1, 4294967168  ;;  %s36_s29 = sadd.s32 1, %s2626_s29   ;;  %s3217_s23 = sld [smem:[#allocation22_spill]] }
 0x9bd   : > { %p33_p6 = scmp.ge.s32.totalorder %s36_s29, 4   ;;  %s3218_s24 = smov %s2610_s25 }
 0x9be   : > { %s3219_s25 = smov %s2614_s26  ;;  %s3220_s26 = smov %s2871_s16 }
 0x9bf   : > { %s3221_s27 = smov %s2622_s28  ;;  %35 = sbr.rel (!%p33_p6) target bundleno = 22 (0x16), region = 167 }
 0x9c2   : > { %s3222_s28 = smov %s3217_s23 }
 0x9c4   :  { %1827 = vsyncpa [#allocation5], 1 }
 0x9c5   :  { %1829 = vsyncpa [#allocation5 + $0x1], 1 }
 0x9c6   :  { %1830 = vsyncpa [#allocation8], 1 }
 0x9c7   :  { %1831 = vsyncpa [#allocation11], 1 }
 0x9c8   :  { %1832 = vsyncpa [#allocation14], 1 }
 0x9c9   :  { %1833 = vsyncpa [#allocation6], 1 }
 0x9ca   :  { %1835 = vsyncpa [#allocation6 + $0x1], 1 }

</bundles_post_ra>
